<compile_context>
chip_gen: v6e
topology: v6e:2x2x1
jax: 0.10.0
libtpu: 0.0.40
codegen_flags: <defaults>
</compile_context>

<pallas_src>
import functools

import jax
import jax.numpy as jnp
from jax import lax
from jax.experimental import pallas as pl
from jax.experimental.pallas import tpu as pltpu


# ---------------------------------------------------------------------------
# helpers
# ---------------------------------------------------------------------------
def _round_up(x, m):
    return ((x + m - 1) // m) * m


def _pick_tile(n, candidates=(256, 128, 64, 32, 16, 8)):
    # 256 suits v6e/v7x; smaller powers of two cover v5e-ish / small maps.
    # Fall back to the full axis for odd sizes (full-dim blocks are always
    # legal and still correct, just less pipelined).
    for t in candidates:
        if n % t == 0:
            return t
    return n


def _pad_last(x, target):
    pad = target - x.shape[-1]
    if pad == 0:
        return x
    widths = [(0, 0)] * (x.ndim - 1) + [(0, pad)]
    return jnp.pad(x, widths)


def _vmem_limit(nbytes):
    # Explicit scoped-VMEM budget from tile arithmetic (+50% slack), clamped
    # so it is valid on v5e/v6e (128 MiB physical) and v7x (64 MiB physical).
    return int(min(max(int(nbytes * 1.5) + (2 << 20), 16 << 20), 64 << 20))


# ---------------------------------------------------------------------------
# Pass 1: style projections   G = g(mvn(style)),   V = style @ (Wo @ Wh)^T
# ---------------------------------------------------------------------------
def _style_proj_kernel(style_ref, mean_ref, rstd_ref, wg_ref, bg_ref, who_ref,
                       g_ref, v_ref):
    s = style_ref[0]                                        # (tk, Cp) f32
    sn = ((s - mean_ref[0]) * rstd_ref[0]).astype(wg_ref.dtype)
    g = jnp.dot(sn, wg_ref[...], preferred_element_type=jnp.float32) + bg_ref[...]
    g_ref[0] = g.astype(g_ref.dtype)
    v = jnp.dot(s.astype(who_ref.dtype), who_ref[...],
                preferred_element_type=jnp.float32)
    v_ref[0] = v.astype(v_ref.dtype)


# ---------------------------------------------------------------------------
# Pass 2: flash-style attention + residual epilogue
# ---------------------------------------------------------------------------
def _sanet_attn_kernel(c_ref, mean_ref, rstd_ref, wf_ref, bf_ref, bconst_ref,
                       g_ref, v_ref, out_ref,
                       fm_ref, m_ref, l_ref, acc_ref, *, approx_recip):
    k = pl.program_id(2)

    @pl.when(k == 0)
    def _init():
        # Project this content tile once; it stays resident across all k steps.
        c = c_ref[0]                                        # (tq, Cp) f32
        cn = ((c - mean_ref[0]) * rstd_ref[0]).astype(wf_ref.dtype)
        fm = jnp.dot(cn, wf_ref[...], preferred_element_type=jnp.float32)
        fm_ref[...] = (fm + bf_ref[...]).astype(fm_ref.dtype)
        m_ref[...] = jnp.full(m_ref.shape, -jnp.inf, dtype=m_ref.dtype)
        l_ref[...] = jnp.zeros(l_ref.shape, dtype=l_ref.dtype)
        acc_ref[...] = jnp.zeros(acc_ref.shape, dtype=acc_ref.dtype)

    # Scores for this (content-tile, style-tile) pair. Contract the last dims
    # of both operands -> no Gm^T transpose through the XLU.
    s = lax.dot_general(fm_ref[...], g_ref[0],
                        (((1,), (1,)), ((), ())),
                        preferred_element_type=jnp.float32)  # (tq, tk) f32

    # Online softmax update (f32).
    m_prev = m_ref[...]
    m_new = jnp.maximum(m_prev, jnp.max(s, axis=-1, keepdims=True))
    alpha = jnp.exp(m_prev - m_new)
    p = jnp.exp(s - m_new)
    l_ref[...] = alpha * l_ref[...] + jnp.sum(p, axis=-1, keepdims=True)
    acc_ref[...] = alpha * acc_ref[...] + jnp.dot(
        p.astype(v_ref.dtype), v_ref[0], preferred_element_type=jnp.float32)
    m_ref[...] = m_new

    @pl.when(k == pl.num_programs(2) - 1)
    def _finalize():
        if approx_recip:
            o = acc_ref[...] * pl.reciprocal(l_ref[...], approx=True)  # EUP slot
        else:
            o = acc_ref[...] / l_ref[...]
        out_ref[0] = (o + bconst_ref[...] + c_ref[0]).astype(out_ref.dtype)


# ---------------------------------------------------------------------------
# wrapper
# ---------------------------------------------------------------------------
def sanet_forward(content_nchw, style_nchw, params, *, compute_dtype=jnp.float32):
    """SANet forward. content/style: (B, C, H, W) float32 NCHW. Returns NCHW."""
    B, C, Hc, Wc = content_nchw.shape
    Bs, Cs, Hs, Ws = style_nchw.shape
    assert (B, C) == (Bs, Cs)
    HWc, HWs = Hc * Wc, Hs * Ws
    eps = 1e-5
    Cp = _round_up(C, 128)               # lane-dense channels (zero padded)

    # Per-(batch, channel) normalization stats (unbiased variance like torch),
    # computed once, fed to kernels as tiny (B, 1, Cp) inputs.
    def _stats(x_nchw, hw):
        flat = x_nchw.reshape(B, C, hw)
        mean = jnp.mean(flat, axis=2)
        rstd = lax.rsqrt(jnp.var(flat, axis=2, ddof=1) + eps)
        return mean, rstd

    mean_c, rstd_c = _stats(content_nchw, HWc)
    mean_s, rstd_s = _stats(style_nchw, HWs)

    # NCHW -> (B, HW, Cp) channels-last rows.
    def _rows(x_nchw, hw):
        return _pad_last(jnp.transpose(x_nchw.reshape(B, C, hw), (0, 2, 1)), Cp)

    content = _rows(content_nchw, HWc)
    style = _rows(style_nchw, HWs)

    def _stat3(v):                        # (B, C) -> (B, 1, Cp)
        return _pad_last(v.reshape(B, 1, C), Cp)

    mean_c3, rstd_c3 = _stat3(mean_c), _stat3(rstd_c)
    mean_s3, rstd_s3 = _stat3(mean_s), _stat3(rstd_s)

    # 1x1-conv weights (C_out, C_in) -> right-multiply form (Cp_in, Cp_out).
    def _wk(w):
        return jnp.pad(w.T, ((0, Cp - C), (0, Cp - C))).astype(compute_dtype)

    def _bk(b):                           # (C,) -> (1, Cp) f32
        return _pad_last(b.reshape(1, C), Cp)

    wf_k = _wk(params["wf"])
    wg_k = _wk(params["wg"])
    # Fold h-conv and out_conv:  (style @ Wh^T + bh) @ Wo^T + bo
    #   = style @ (Wo @ Wh)^T + (Wo @ bh + bo)        (softmax rows sum to 1)
    who_k = _wk(params["wo"] @ params["wh"])
    bf_k = _bk(params["bf"])
    bg_k = _bk(params["bg"])
    bconst = _bk(params["bh"] @ params["wo"].T + params["bo"])

    tq = _pick_tile(HWc)
    tk = _pick_tile(HWs)
    nq, nk = HWc // tq, HWs // tk
    cb = jnp.dtype(compute_dtype).itemsize
    use_approx = jnp.dtype(compute_dtype) != jnp.dtype(jnp.float32)

    # ---- Pass 1: style projections (row-tiled, fully parallel) -------------
    p1_vmem = (2 * tk * Cp * 4            # style tile (double-buffered)
               + 4 * Cp * Cp * cb         # Wg, (Wo Wh)^T
               + 4 * tk * Cp * cb         # G, V output tiles
               + 8 * Cp * 4)              # stats + bias
    gm, vm = pl.pallas_call(
        _style_proj_kernel,
        out_shape=(jax.ShapeDtypeStruct((B, HWs, Cp), compute_dtype),
                   jax.ShapeDtypeStruct((B, HWs, Cp), compute_dtype)),
        grid_spec=pltpu.PrefetchScalarGridSpec(
            num_scalar_prefetch=0,
            grid=(B, nk),
            in_specs=[
                pl.BlockSpec((1, tk, Cp), lambda b, k: (b, k, 0)),   # style
                pl.BlockSpec((1, 1, Cp), lambda b, k: (b, 0, 0)),    # mean_s
                pl.BlockSpec((1, 1, Cp), lambda b, k: (b, 0, 0)),    # rstd_s
                # constant index maps -> the pipeline fetches weights once
                pl.BlockSpec((Cp, Cp), lambda b, k: (0, 0)),         # Wg
                pl.BlockSpec((1, Cp), lambda b, k: (0, 0)),          # bg
                pl.BlockSpec((Cp, Cp), lambda b, k: (0, 0)),         # (Wo Wh)^T
            ],
            out_specs=[pl.BlockSpec((1, tk, Cp), lambda b, k: (b, k, 0)),
                       pl.BlockSpec((1, tk, Cp), lambda b, k: (b, k, 0))],
        ),
        compiler_params=pltpu.CompilerParams(
            dimension_semantics=("parallel", "parallel"),
            vmem_limit_bytes=_vmem_limit(p1_vmem),
        ),
    )(style, mean_s3, rstd_s3, wg_k, bg_k, who_k)

    # ---- Pass 2: flash-style attention + residual ---------------------------
    p2_vmem = (2 * tq * Cp * 4            # content tile
               + 2 * tq * Cp * 4          # output tile
               + 2 * Cp * Cp * cb         # Wf
               + 4 * tk * Cp * cb         # G, V tiles
               + tq * Cp * cb             # F scratch
               + tq * Cp * 4              # acc scratch
               + 2 * tq * 128 * 4         # m, l scratch (lane padded)
               + 12 * Cp * 4)             # stats + biases
    out_rows = pl.pallas_call(
        functools.partial(_sanet_attn_kernel, approx_recip=use_approx),
        out_shape=jax.ShapeDtypeStruct((B, HWc, Cp), jnp.float32),
        grid_spec=pltpu.PrefetchScalarGridSpec(
            num_scalar_prefetch=0,
            grid=(B, nq, nk),             # style (reduction) axis last
            in_specs=[
                pl.BlockSpec((1, tq, Cp), lambda b, q, k: (b, q, 0)),   # content
                pl.BlockSpec((1, 1, Cp), lambda b, q, k: (b, 0, 0)),    # mean_c
                pl.BlockSpec((1, 1, Cp), lambda b, q, k: (b, 0, 0)),    # rstd_c
                pl.BlockSpec((Cp, Cp), lambda b, q, k: (0, 0)),         # Wf
                pl.BlockSpec((1, Cp), lambda b, q, k: (0, 0)),          # bf
                pl.BlockSpec((1, Cp), lambda b, q, k: (0, 0)),          # Wo@bh+bo
                pl.BlockSpec((1, tk, Cp), lambda b, q, k: (b, k, 0)),   # G
                pl.BlockSpec((1, tk, Cp), lambda b, q, k: (b, k, 0)),   # V
            ],
            out_specs=pl.BlockSpec((1, tq, Cp), lambda b, q, k: (b, q, 0)),
            scratch_shapes=[
                pltpu.VMEM((tq, Cp), compute_dtype),   # F (content projection)
                pltpu.VMEM((tq, 1), jnp.float32),      # running max m
                pltpu.VMEM((tq, 1), jnp.float32),      # running sum l
                pltpu.VMEM((tq, Cp), jnp.float32),     # output accumulator
            ],
        ),
        compiler_params=pltpu.CompilerParams(
            dimension_semantics=("parallel", "parallel", "arbitrary"),
            vmem_limit_bytes=_vmem_limit(p2_vmem),
        ),
    )(content, mean_c3, rstd_c3, wf_k, bf_k, bconst, gm, vm)

    # (B, HWc, Cp) -> NCHW, dropping channel padding.
    out = out_rows[:, :, :C]
    return jnp.transpose(out, (0, 2, 1)).reshape(B, C, Hc, Wc)


# ---------------------------------------------------------------------------
# pure-JAX reference (mirrors the PyTorch forward, NCHW)
# ---------------------------------------------------------------------------
def sanet_reference(content, style, params):
    def mvn(feat):
        B, C, H, W = feat.shape
        flat = feat.reshape(B, C, H * W)
        mean = jnp.mean(flat, axis=2).reshape(B, C, 1, 1)
        var = jnp.var(flat, axis=2, ddof=1) + 1e-5
        std = jnp.sqrt(var).reshape(B, C, 1, 1)
        return (feat - mean) / std

    def conv1x1(x, w, b):
        return jnp.einsum("oc,bchw->bohw", w, x) + b[None, :, None, None]

    Fm = conv1x1(mvn(content), params["wf"], params["bf"])
    Gm = conv1x1(mvn(style), params["wg"], params["bg"])
    Hm = conv1x1(style, params["wh"], params["bh"])
    B, C, h, w = Fm.shape
    Fm = jnp.transpose(Fm.reshape(B, C, h * w), (0, 2, 1))   # (B, HWc, C)
    B, C, h2, w2 = Gm.shape
    Gm = Gm.reshape(B, C, h2 * w2)                            # (B, C, HWs)
    S = jnp.einsum("bpc,bcq->bpq", Fm, Gm)
    S = jax.nn.softmax(S, axis=-1)
    Hm = Hm.reshape(B, C, h2 * w2)                            # (B, C, HWs)
    O = jnp.einsum("bcq,bpq->bcp", Hm, S)                     # (B, C, HWc)
    B, C, hc, wc = content.shape
    O = O.reshape(B, C, hc, wc)
    O = conv1x1(O, params["wo"], params["bo"])
    return O + content


def make_params(key, C):
    ks = jax.random.split(key, 8)
    scale = 1.0 / jnp.sqrt(C)
    return {
        "wf": jax.random.uniform(ks[0], (C, C), jnp.float32, -scale, scale),
        "bf": jax.random.uniform(ks[1], (C,), jnp.float32, -scale, scale),
        "wg": jax.random.uniform(ks[2], (C, C), jnp.float32, -scale, scale),
        "bg": jax.random.uniform(ks[3], (C,), jnp.float32, -scale, scale),
        "wh": jax.random.uniform(ks[4], (C, C), jnp.float32, -scale, scale),
        "bh": jax.random.uniform(ks[5], (C,), jnp.float32, -scale, scale),
        "wo": jax.random.uniform(ks[6], (C, C), jnp.float32, -scale, scale),
        "bo": jax.random.uniform(ks[7], (C,), jnp.float32, -scale, scale),
    }


if __name__ == "__main__":
    key = jax.random.PRNGKey(0)
    k_c, k_s, k_p = jax.random.split(key, 3)

    B, C, H, W = 2, 32, 8, 8
    content = jax.random.normal(k_c, (B, C, H, W), jnp.float32)
    style = jax.random.normal(k_s, (B, C, H, W), jnp.float32)
    params = make_params(k_p, C)

    ref = jax.block_until_ready(sanet_reference(content, style, params))

    # f32 MXU path (exact softmax-denominator division).
    fwd_f32 = jax.jit(functools.partial(sanet_forward, compute_dtype=jnp.float32))
    out_f32 = jax.block_until_ready(fwd_f32(content, style, params))
    assert out_f32.shape == (B, C, H, W)
    if not bool(jnp.allclose(out_f32, ref, atol=5e-3, rtol=5e-3)):
        raise AssertionError("f32 Pallas kernel output mismatch vs reference")

    # bf16 MXU inputs / f32 accumulation (v6e / v7x fast path) — looser check.
    fwd_bf16 = jax.jit(functools.partial(sanet_forward, compute_dtype=jnp.bfloat16))
    out_bf16 = jax.block_until_ready(fwd_bf16(content, style, params))
    rel_err = jnp.max(jnp.abs(out_bf16 - ref)) / jnp.max(jnp.abs(ref))
    if not bool(rel_err < 7.5e-2):
        raise AssertionError(f"bf16 Pallas kernel mismatch vs reference: {rel_err}")

    print("KERNEL_OK")
</pallas_src>

<mosaic_0001>
module attributes {stable_mosaic.version = 11 : i64} {
  func.func @_style_proj_kernel(%arg0: i32, %arg1: i32, %arg2: memref<1x64x128xf32, #tpu.memory_space<vmem>>, %arg3: memref<1x1x128xf32, #tpu.memory_space<vmem>>, %arg4: memref<1x1x128xf32, #tpu.memory_space<vmem>>, %arg5: memref<128x128xf32, #tpu.memory_space<vmem>>, %arg6: memref<1x128xf32, #tpu.memory_space<vmem>>, %arg7: memref<128x128xf32, #tpu.memory_space<vmem>>, %arg8: memref<1x64x128xf32, #tpu.memory_space<vmem>>, %arg9: memref<1x64x128xf32, #tpu.memory_space<vmem>>) attributes {dimension_semantics = [#tpu.dimension_semantics<parallel>, #tpu.dimension_semantics<parallel>], iteration_bounds = array<i64: 2, 1>, scalar_prefetch = 0 : i64, scratch_operands = 0 : i64, tpu.core_type = #tpu.core_type<tc>, window_params = [{transform_indices = @transform_0, window_bounds = array<i64: 1, 64, 128>}, {transform_indices = @transform_1, window_bounds = array<i64: 1, 1, 128>}, {transform_indices = @transform_2, window_bounds = array<i64: 1, 1, 128>}, {pipeline_mode = #tpu.pipeline_mode<synchronous>, transform_indices = @transform_3, window_bounds = array<i64: 128, 128>}, {pipeline_mode = #tpu.pipeline_mode<synchronous>, transform_indices = @transform_4, window_bounds = array<i64: 1, 128>}, {pipeline_mode = #tpu.pipeline_mode<synchronous>, transform_indices = @transform_5, window_bounds = array<i64: 128, 128>}, {transform_indices = @transform_6, window_bounds = array<i64: 1, 64, 128>}, {transform_indices = @transform_7, window_bounds = array<i64: 1, 64, 128>}]} {
    %c0 = arith.constant 0 : index
    %c0_0 = arith.constant 0 : index
    %c0_1 = arith.constant 0 : index
    %0 = vector.load %arg2[%c0, %c0_0, %c0_1] : memref<1x64x128xf32, #tpu.memory_space<vmem>>, vector<1x64x128xf32>
    %1 = vector.shape_cast %0 : vector<1x64x128xf32> to vector<64x128xf32>
    %c0_2 = arith.constant 0 : index
    %c0_3 = arith.constant 0 : index
    %c0_4 = arith.constant 0 : index
    %2 = vector.load %arg3[%c0_2, %c0_3, %c0_4] : memref<1x1x128xf32, #tpu.memory_space<vmem>>, vector<1x1x128xf32>
    %3 = vector.shape_cast %2 : vector<1x1x128xf32> to vector<1x128xf32>
    %4 = vector.broadcast %3 : vector<1x128xf32> to vector<64x128xf32>
    %5 = arith.subf %1, %4 : vector<64x128xf32>
    %c0_5 = arith.constant 0 : index
    %c0_6 = arith.constant 0 : index
    %c0_7 = arith.constant 0 : index
    %6 = vector.load %arg4[%c0_5, %c0_6, %c0_7] : memref<1x1x128xf32, #tpu.memory_space<vmem>>, vector<1x1x128xf32>
    %7 = vector.shape_cast %6 : vector<1x1x128xf32> to vector<1x128xf32>
    %8 = vector.broadcast %7 : vector<1x128xf32> to vector<64x128xf32>
    %9 = arith.mulf %5, %8 : vector<64x128xf32>
    %c0_8 = arith.constant 0 : index
    %c0_9 = arith.constant 0 : index
    %10 = vector.load %arg5[%c0_8, %c0_9] : memref<128x128xf32, #tpu.memory_space<vmem>>, vector<128x128xf32>
    %cst = arith.constant dense<0.000000e+00> : vector<64x128xf32>
    %11 = tpu.matmul %9, %10, %cst {dimension_numbers = #tpu.dot_dimension_numbers<[1], [0], [0], [1], [0, 0, 1, 1], [], []>} : vector<64x128xf32>, vector<128x128xf32>, vector<64x128xf32> -> vector<64x128xf32>
    %c0_10 = arith.constant 0 : index
    %c0_11 = arith.constant 0 : index
    %12 = vector.load %arg6[%c0_10, %c0_11] : memref<1x128xf32, #tpu.memory_space<vmem>>, vector<1x128xf32>
    %13 = vector.broadcast %12 : vector<1x128xf32> to vector<64x128xf32>
    %14 = arith.addf %11, %13 : vector<64x128xf32>
    %c0_12 = arith.constant 0 : index
    %c0_13 = arith.constant 0 : index
    %c0_14 = arith.constant 0 : index
    %15 = vector.load %arg8[%c0_12, %c0_13, %c0_14] : memref<1x64x128xf32, #tpu.memory_space<vmem>>, vector<1x64x128xf32>
    %16 = vector.shape_cast %15 : vector<1x64x128xf32> to vector<64x128xf32>
    %17 = vector.shape_cast %14 : vector<64x128xf32> to vector<1x64x128xf32>
    tpu.vector_store %arg8[%c0_12, %c0_13, %c0_14], %17 {strides = array<i32>} : memref<1x64x128xf32, #tpu.memory_space<vmem>>, vector<1x64x128xf32>,
    %c0_15 = arith.constant 0 : index
    %c0_16 = arith.constant 0 : index
    %18 = vector.load %arg7[%c0_15, %c0_16] : memref<128x128xf32, #tpu.memory_space<vmem>>, vector<128x128xf32>
    %cst_17 = arith.constant dense<0.000000e+00> : vector<64x128xf32>
    %19 = tpu.matmul %1, %18, %cst_17 {dimension_numbers = #tpu.dot_dimension_numbers<[1], [0], [0], [1], [0, 0, 1, 1], [], []>} : vector<64x128xf32>, vector<128x128xf32>, vector<64x128xf32> -> vector<64x128xf32>
    %c0_18 = arith.constant 0 : index
    %c0_19 = arith.constant 0 : index
    %c0_20 = arith.constant 0 : index
    %20 = vector.load %arg9[%c0_18, %c0_19, %c0_20] : memref<1x64x128xf32, #tpu.memory_space<vmem>>, vector<1x64x128xf32>
    %21 = vector.shape_cast %20 : vector<1x64x128xf32> to vector<64x128xf32>
    %22 = vector.shape_cast %19 : vector<64x128xf32> to vector<1x64x128xf32>
    tpu.vector_store %arg9[%c0_18, %c0_19, %c0_20], %22 {strides = array<i32>} : memref<1x64x128xf32, #tpu.memory_space<vmem>>, vector<1x64x128xf32>,
    return
  }
  func.func @transform_0(%arg0: i32, %arg1: i32) -> (i32, i32, i32) {
    %c0_i32 = arith.constant 0 : i32
    %c0_i32_0 = arith.constant 0 : i32
    return %arg0, %arg1, %c0_i32 : i32, i32, i32
  }
  func.func @transform_1(%arg0: i32, %arg1: i32) -> (i32, i32, i32) {
    %c0_i32 = arith.constant 0 : i32
    %c0_i32_0 = arith.constant 0 : i32
    %c0_i32_1 = arith.constant 0 : i32
    return %arg0, %c0_i32, %c0_i32_0 : i32, i32, i32
  }
  func.func @transform_2(%arg0: i32, %arg1: i32) -> (i32, i32, i32) {
    %c0_i32 = arith.constant 0 : i32
    %c0_i32_0 = arith.constant 0 : i32
    %c0_i32_1 = arith.constant 0 : i32
    return %arg0, %c0_i32, %c0_i32_0 : i32, i32, i32
  }
  func.func @transform_3(%arg0: i32, %arg1: i32) -> (i32, i32) {
    %c0_i32 = arith.constant 0 : i32
    %c0_i32_0 = arith.constant 0 : i32
    %c0_i32_1 = arith.constant 0 : i32
    return %c0_i32, %c0_i32_0 : i32, i32
  }
  func.func @transform_4(%arg0: i32, %arg1: i32) -> (i32, i32) {
    %c0_i32 = arith.constant 0 : i32
    %c0_i32_0 = arith.constant 0 : i32
    %c0_i32_1 = arith.constant 0 : i32
    return %c0_i32, %c0_i32_0 : i32, i32
  }
  func.func @transform_5(%arg0: i32, %arg1: i32) -> (i32, i32) {
    %c0_i32 = arith.constant 0 : i32
    %c0_i32_0 = arith.constant 0 : i32
    %c0_i32_1 = arith.constant 0 : i32
    return %c0_i32, %c0_i32_0 : i32, i32
  }
  func.func @transform_6(%arg0: i32, %arg1: i32) -> (i32, i32, i32) {
    %c0_i32 = arith.constant 0 : i32
    %c0_i32_0 = arith.constant 0 : i32
    return %arg0, %arg1, %c0_i32 : i32, i32, i32
  }
  func.func @transform_7(%arg0: i32, %arg1: i32) -> (i32, i32, i32) {
    %c0_i32 = arith.constant 0 : i32
    %c0_i32_0 = arith.constant 0 : i32
    return %arg0, %arg1, %c0_i32 : i32, i32, i32
  }
}

module attributes {stable_mosaic.version = 11 : i64} {
  func.func @_sanet_attn_kernel(%arg0: i32, %arg1: i32, %arg2: i32, %arg3: memref<1x64x128xf32, #tpu.memory_space<vmem>>, %arg4: memref<1x1x128xf32, #tpu.memory_space<vmem>>, %arg5: memref<1x1x128xf32, #tpu.memory_space<vmem>>, %arg6: memref<128x128xf32, #tpu.memory_space<vmem>>, %arg7: memref<1x128xf32, #tpu.memory_space<vmem>>, %arg8: memref<1x128xf32, #tpu.memory_space<vmem>>, %arg9: memref<1x64x128xf32, #tpu.memory_space<vmem>>, %arg10: memref<1x64x128xf32, #tpu.memory_space<vmem>>, %arg11: memref<1x64x128xf32, #tpu.memory_space<vmem>>, %arg12: memref<64x128xf32, #tpu.memory_space<vmem>>, %arg13: memref<64x1xf32, #tpu.memory_space<vmem>>, %arg14: memref<64x1xf32, #tpu.memory_space<vmem>>, %arg15: memref<64x128xf32, #tpu.memory_space<vmem>>) attributes {dimension_semantics = [#tpu.dimension_semantics<parallel>, #tpu.dimension_semantics<parallel>, #tpu.dimension_semantics<arbitrary>], iteration_bounds = array<i64: 2, 1, 1>, scalar_prefetch = 0 : i64, scratch_operands = 4 : i64, tpu.core_type = #tpu.core_type<tc>, window_params = [{transform_indices = @transform_0, window_bounds = array<i64: 1, 64, 128>}, {transform_indices = @transform_1, window_bounds = array<i64: 1, 1, 128>}, {transform_indices = @transform_2, window_bounds = array<i64: 1, 1, 128>}, {pipeline_mode = #tpu.pipeline_mode<synchronous>, transform_indices = @transform_3, window_bounds = array<i64: 128, 128>}, {pipeline_mode = #tpu.pipeline_mode<synchronous>, transform_indices = @transform_4, window_bounds = array<i64: 1, 128>}, {pipeline_mode = #tpu.pipeline_mode<synchronous>, transform_indices = @transform_5, window_bounds = array<i64: 1, 128>}, {transform_indices = @transform_6, window_bounds = array<i64: 1, 64, 128>}, {transform_indices = @transform_7, window_bounds = array<i64: 1, 64, 128>}, {transform_indices = @transform_8, window_bounds = array<i64: 1, 64, 128>}]} {
    %c0_i32 = arith.constant 0 : i32
    %0 = arith.cmpi eq, %arg2, %c0_i32 : i32
    %1 = arith.extui %0 : i1 to i32
    %c0_i32_0 = arith.constant 0 : i32
    %2 = arith.cmpi ne, %1, %c0_i32_0 : i32
    scf.if %2 {
      %c0_25 = arith.constant 0 : index
      %c0_26 = arith.constant 0 : index
      %c0_27 = arith.constant 0 : index
      %34 = vector.load %arg3[%c0_25, %c0_26, %c0_27] : memref<1x64x128xf32, #tpu.memory_space<vmem>>, vector<1x64x128xf32>
      %35 = vector.shape_cast %34 : vector<1x64x128xf32> to vector<64x128xf32>
      %c0_28 = arith.constant 0 : index
      %c0_29 = arith.constant 0 : index
      %c0_30 = arith.constant 0 : index
      %36 = vector.load %arg4[%c0_28, %c0_29, %c0_30] : memref<1x1x128xf32, #tpu.memory_space<vmem>>, vector<1x1x128xf32>
      %37 = vector.shape_cast %36 : vector<1x1x128xf32> to vector<1x128xf32>
      %38 = vector.broadcast %37 : vector<1x128xf32> to vector<64x128xf32>
      %39 = arith.subf %35, %38 : vector<64x128xf32>
      %c0_31 = arith.constant 0 : index
      %c0_32 = arith.constant 0 : index
      %c0_33 = arith.constant 0 : index
      %40 = vector.load %arg5[%c0_31, %c0_32, %c0_33] : memref<1x1x128xf32, #tpu.memory_space<vmem>>, vector<1x1x128xf32>
      %41 = vector.shape_cast %40 : vector<1x1x128xf32> to vector<1x128xf32>
      %42 = vector.broadcast %41 : vector<1x128xf32> to vector<64x128xf32>
      %43 = arith.mulf %39, %42 : vector<64x128xf32>
      %c0_34 = arith.constant 0 : index
      %c0_35 = arith.constant 0 : index
      %44 = vector.load %arg6[%c0_34, %c0_35] : memref<128x128xf32, #tpu.memory_space<vmem>>, vector<128x128xf32>
      %cst_36 = arith.constant dense<0.000000e+00> : vector<64x128xf32>
      %45 = tpu.matmul %43, %44, %cst_36 {dimension_numbers = #tpu.dot_dimension_numbers<[1], [0], [0], [1], [0, 0, 1, 1], [], []>} : vector<64x128xf32>, vector<128x128xf32>, vector<64x128xf32> -> vector<64x128xf32>
      %c0_37 = arith.constant 0 : index
      %c0_38 = arith.constant 0 : index
      %46 = vector.load %arg7[%c0_37, %c0_38] : memref<1x128xf32, #tpu.memory_space<vmem>>, vector<1x128xf32>
      %47 = vector.broadcast %46 : vector<1x128xf32> to vector<64x128xf32>
      %48 = arith.addf %45, %47 : vector<64x128xf32>
      %c0_39 = arith.constant 0 : index
      %c0_40 = arith.constant 0 : index
      %49 = vector.load %arg12[%c0_39, %c0_40] : memref<64x128xf32, #tpu.memory_space<vmem>>, vector<64x128xf32>
      tpu.vector_store %arg12[%c0_39, %c0_40], %48 {strides = array<i32>} : memref<64x128xf32, #tpu.memory_space<vmem>>, vector<64x128xf32>,
      %cst_41 = arith.constant 0xFF800000 : f32
      %50 = vector.broadcast %cst_41 : f32 to vector<64x1xf32>
      %c0_42 = arith.constant 0 : index
      %c0_43 = arith.constant 0 : index
      %51 = vector.load %arg13[%c0_42, %c0_43] : memref<64x1xf32, #tpu.memory_space<vmem>>, vector<64x1xf32>
      tpu.vector_store %arg13[%c0_42, %c0_43], %50 {strides = array<i32>} : memref<64x1xf32, #tpu.memory_space<vmem>>, vector<64x1xf32>,
      %cst_44 = arith.constant 0.000000e+00 : f32
      %52 = vector.broadcast %cst_44 : f32 to vector<64x1xf32>
      %c0_45 = arith.constant 0 : index
      %c0_46 = arith.constant 0 : index
      %53 = vector.load %arg14[%c0_45, %c0_46] : memref<64x1xf32, #tpu.memory_space<vmem>>, vector<64x1xf32>
      tpu.vector_store %arg14[%c0_45, %c0_46], %52 {strides = array<i32>} : memref<64x1xf32, #tpu.memory_space<vmem>>, vector<64x1xf32>,
      %cst_47 = arith.constant 0.000000e+00 : f32
      %54 = vector.broadcast %cst_47 : f32 to vector<64x128xf32>
      %c0_48 = arith.constant 0 : index
      %c0_49 = arith.constant 0 : index
      %55 = vector.load %arg15[%c0_48, %c0_49] : memref<64x128xf32, #tpu.memory_space<vmem>>, vector<64x128xf32>
      tpu.vector_store %arg15[%c0_48, %c0_49], %54 {strides = array<i32>} : memref<64x128xf32, #tpu.memory_space<vmem>>, vector<64x128xf32>,
    } else {
    }
    %c0 = arith.constant 0 : index
    %c0_1 = arith.constant 0 : index
    %3 = vector.load %arg12[%c0, %c0_1] : memref<64x128xf32, #tpu.memory_space<vmem>>, vector<64x128xf32>
    %c0_2 = arith.constant 0 : index
    %c0_3 = arith.constant 0 : index
    %c0_4 = arith.constant 0 : index
    %4 = vector.load %arg9[%c0_2, %c0_3, %c0_4] : memref<1x64x128xf32, #tpu.memory_space<vmem>>, vector<1x64x128xf32>
    %5 = vector.shape_cast %4 : vector<1x64x128xf32> to vector<64x128xf32>
    %cst = arith.constant dense<0.000000e+00> : vector<64x64xf32>
    %6 = tpu.matmul %3, %5, %cst {dimension_numbers = #tpu.dot_dimension_numbers<[1], [1], [0], [0], [0, 0, 1, 0], [], []>} : vector<64x128xf32>, vector<64x128xf32>, vector<64x64xf32> -> vector<64x64xf32>
    %c0_5 = arith.constant 0 : index
    %c0_6 = arith.constant 0 : index
    %7 = vector.load %arg13[%c0_5, %c0_6] : memref<64x1xf32, #tpu.memory_space<vmem>>, vector<64x1xf32>
    %cst_7 = arith.constant dense<0xFF800000> : vector<64xf32>
    %8 = vector.multi_reduction <maximumf>, %6, %cst_7 [1] : vector<64x64xf32> to vector<64xf32>
    %9 = vector.shape_cast %8 : vector<64xf32> to vector<64x1xf32>
    %10 = arith.maximumf %7, %9 : vector<64x1xf32>
    %11 = arith.subf %7, %10 : vector<64x1xf32>
    %12 = math.exp %11 : vector<64x1xf32>
    %13 = vector.broadcast %10 : vector<64x1xf32> to vector<64x64xf32>
    %14 = arith.subf %6, %13 : vector<64x64xf32>
    %15 = math.exp %14 : vector<64x64xf32>
    %c0_8 = arith.constant 0 : index
    %c0_9 = arith.constant 0 : index
    %16 = vector.load %arg14[%c0_8, %c0_9] : memref<64x1xf32, #tpu.memory_space<vmem>>, vector<64x1xf32>
    %17 = arith.mulf %12, %16 : vector<64x1xf32>
    %cst_10 = arith.constant dense<0.000000e+00> : vector<64xf32>
    %18 = vector.multi_reduction <add>, %15, %cst_10 [1] : vector<64x64xf32> to vector<64xf32>
    %19 = vector.shape_cast %18 : vector<64xf32> to vector<64x1xf32>
    %20 = arith.addf %17, %19 : vector<64x1xf32>
    %c0_11 = arith.constant 0 : index
    %c0_12 = arith.constant 0 : index
    %21 = vector.load %arg14[%c0_11, %c0_12] : memref<64x1xf32, #tpu.memory_space<vmem>>, vector<64x1xf32>
    tpu.vector_store %arg14[%c0_11, %c0_12], %20 {strides = array<i32>} : memref<64x1xf32, #tpu.memory_space<vmem>>, vector<64x1xf32>,
    %c0_13 = arith.constant 0 : index
    %c0_14 = arith.constant 0 : index
    %22 = vector.load %arg15[%c0_13, %c0_14] : memref<64x128xf32, #tpu.memory_space<vmem>>, vector<64x128xf32>
    %23 = vector.broadcast %12 : vector<64x1xf32> to vector<64x128xf32>
    %24 = arith.mulf %23, %22 : vector<64x128xf32>
    %c0_15 = arith.constant 0 : index
    %c0_16 = arith.constant 0 : index
    %c0_17 = arith.constant 0 : index
    %25 = vector.load %arg10[%c0_15, %c0_16, %c0_17] : memref<1x64x128xf32, #tpu.memory_space<vmem>>, vector<1x64x128xf32>
    %26 = vector.shape_cast %25 : vector<1x64x128xf32> to vector<64x128xf32>
    %cst_18 = arith.constant dense<0.000000e+00> : vector<64x128xf32>
    %27 = tpu.matmul %15, %26, %cst_18 {dimension_numbers = #tpu.dot_dimension_numbers<[1], [0], [0], [1], [0, 0, 1, 1], [], []>} : vector<64x64xf32>, vector<64x128xf32>, vector<64x128xf32> -> vector<64x128xf32>
    %28 = arith.addf %24, %27 : vector<64x128xf32>
    %c0_19 = arith.constant 0 : index
    %c0_20 = arith.constant 0 : index
    %29 = vector.load %arg15[%c0_19, %c0_20] : memref<64x128xf32, #tpu.memory_space<vmem>>, vector<64x128xf32>
    tpu.vector_store %arg15[%c0_19, %c0_20], %28 {strides = array<i32>} : memref<64x128xf32, #tpu.memory_space<vmem>>, vector<64x128xf32>,
    %c0_21 = arith.constant 0 : index
    %c0_22 = arith.constant 0 : index
    %30 = vector.load %arg13[%c0_21, %c0_22] : memref<64x1xf32, #tpu.memory_space<vmem>>, vector<64x1xf32>
    tpu.vector_store %arg13[%c0_21, %c0_22], %10 {strides = array<i32>} : memref<64x1xf32, #tpu.memory_space<vmem>>, vector<64x1xf32>,
    %c0_i32_23 = arith.constant 0 : i32
    %31 = arith.cmpi eq, %arg2, %c0_i32_23 : i32
    %32 = arith.extui %31 : i1 to i32
    %c0_i32_24 = arith.constant 0 : i32
    %33 = arith.cmpi ne, %32, %c0_i32_24 : i32
    scf.if %33 {
      %c0_25 = arith.constant 0 : index
      %c0_26 = arith.constant 0 : index
      %34 = vector.load %arg15[%c0_25, %c0_26] : memref<64x128xf32, #tpu.memory_space<vmem>>, vector<64x128xf32>
      %c0_27 = arith.constant 0 : index
      %c0_28 = arith.constant 0 : index
      %35 = vector.load %arg14[%c0_27, %c0_28] : memref<64x1xf32, #tpu.memory_space<vmem>>, vector<64x1xf32>
      %36 = vector.broadcast %35 : vector<64x1xf32> to vector<64x128xf32>
      %37 = arith.divf %34, %36 : vector<64x128xf32>
      %c0_29 = arith.constant 0 : index
      %c0_30 = arith.constant 0 : index
      %38 = vector.load %arg8[%c0_29, %c0_30] : memref<1x128xf32, #tpu.memory_space<vmem>>, vector<1x128xf32>
      %39 = vector.broadcast %38 : vector<1x128xf32> to vector<64x128xf32>
      %40 = arith.addf %37, %39 : vector<64x128xf32>
      %c0_31 = arith.constant 0 : index
      %c0_32 = arith.constant 0 : index
      %c0_33 = arith.constant 0 : index
      %41 = vector.load %arg3[%c0_31, %c0_32, %c0_33] : memref<1x64x128xf32, #tpu.memory_space<vmem>>, vector<1x64x128xf32>
      %42 = vector.shape_cast %41 : vector<1x64x128xf32> to vector<64x128xf32>
      %43 = arith.addf %40, %42 : vector<64x128xf32>
      %c0_34 = arith.constant 0 : index
      %c0_35 = arith.constant 0 : index
      %c0_36 = arith.constant 0 : index
      %44 = vector.load %arg11[%c0_34, %c0_35, %c0_36] : memref<1x64x128xf32, #tpu.memory_space<vmem>>, vector<1x64x128xf32>
      %45 = vector.shape_cast %44 : vector<1x64x128xf32> to vector<64x128xf32>
      %46 = vector.shape_cast %43 : vector<64x128xf32> to vector<1x64x128xf32>
      tpu.vector_store %arg11[%c0_34, %c0_35, %c0_36], %46 {strides = array<i32>} : memref<1x64x128xf32, #tpu.memory_space<vmem>>, vector<1x64x128xf32>,
    } else {
    }
    return
  }
  func.func @transform_0(%arg0: i32, %arg1: i32, %arg2: i32) -> (i32, i32, i32) {
    %c0_i32 = arith.constant 0 : i32
    %c0_i32_0 = arith.constant 0 : i32
    return %arg0, %arg1, %c0_i32 : i32, i32, i32
  }
  func.func @transform_1(%arg0: i32, %arg1: i32, %arg2: i32) -> (i32, i32, i32) {
    %c0_i32 = arith.constant 0 : i32
    %c0_i32_0 = arith.constant 0 : i32
    %c0_i32_1 = arith.constant 0 : i32
    return %arg0, %c0_i32, %c0_i32_0 : i32, i32, i32
  }
  func.func @transform_2(%arg0: i32, %arg1: i32, %arg2: i32) -> (i32, i32, i32) {
    %c0_i32 = arith.constant 0 : i32
    %c0_i32_0 = arith.constant 0 : i32
    %c0_i32_1 = arith.constant 0 : i32
    return %arg0, %c0_i32, %c0_i32_0 : i32, i32, i32
  }
  func.func @transform_3(%arg0: i32, %arg1: i32, %arg2: i32) -> (i32, i32) {
    %c0_i32 = arith.constant 0 : i32
    %c0_i32_0 = arith.constant 0 : i32
    %c0_i32_1 = arith.constant 0 : i32
    return %c0_i32, %c0_i32_0 : i32, i32
  }
  func.func @transform_4(%arg0: i32, %arg1: i32, %arg2: i32) -> (i32, i32) {
    %c0_i32 = arith.constant 0 : i32
    %c0_i32_0 = arith.constant 0 : i32
    %c0_i32_1 = arith.constant 0 : i32
    return %c0_i32, %c0_i32_0 : i32, i32
  }
  func.func @transform_5(%arg0: i32, %arg1: i32, %arg2: i32) -> (i32, i32) {
    %c0_i32 = arith.constant 0 : i32
    %c0_i32_0 = arith.constant 0 : i32
    %c0_i32_1 = arith.constant 0 : i32
    return %c0_i32, %c0_i32_0 : i32, i32
  }
  func.func @transform_6(%arg0: i32, %arg1: i32, %arg2: i32) -> (i32, i32, i32) {
    %c0_i32 = arith.constant 0 : i32
    %c0_i32_0 = arith.constant 0 : i32
    return %arg0, %arg2, %c0_i32 : i32, i32, i32
  }
  func.func @transform_7(%arg0: i32, %arg1: i32, %arg2: i32) -> (i32, i32, i32) {
    %c0_i32 = arith.constant 0 : i32
    %c0_i32_0 = arith.constant 0 : i32
    return %arg0, %arg2, %c0_i32 : i32, i32, i32
  }
  func.func @transform_8(%arg0: i32, %arg1: i32, %arg2: i32) -> (i32, i32, i32) {
    %c0_i32 = arith.constant 0 : i32
    %c0_i32_0 = arith.constant 0 : i32
    return %arg0, %arg1, %c0_i32 : i32, i32, i32
  }
}

</mosaic_0001>

<bundles_post_ra>
// kernel: sanet_forward.2
= control target key start
LH: loop header
LB: loop body
LE: loop exit
PB: predicated region body
PF: predicated region fallthrough
CT: control target
= control target key end

     0   :  { %s1071_s24 = smov 0   ;;  %s1073_s25 = smov 0   ;;  %s1266_s0 = inlined_call_operand.vmem [shape: f32[2,64,128], index: 0, kind: input, shape index: {}]   ;;  %s1267_s1 = inlined_call_operand.vmem [shape: f32[2,1,128], index: 1, kind: input, shape index: {}]   ;;  %s1268_s2 = inlined_call_operand.vmem [shape: f32[2,1,128], index: 2, kind: input, shape index: {}]   ;;  %s1269_s3 = inlined_call_operand.vmem [shape: f32[128,128], index: 3, kind: input, shape index: {}]   ;;  %s1270_s4 = inlined_call_operand.vmem [shape: f32[1,128], index: 4, kind: input, shape index: {}]   ;;  %s1271_s5 = inlined_call_operand.vmem [shape: f32[128,128], index: 5, kind: input, shape index: {}]   ;;  %s1272_s6 = inlined_call_operand.vmem [shape: f32[2,64,128], index: 6, kind: output, shape index: {0}]   ;;  %s1273_s7 = inlined_call_operand.vmem [shape: f32[2,64,128], index: 7, kind: output, shape index: {1}]  }
   0x1   :  { %s1075_s26 = smov 0  }
   0x2 LB: > { %s30_s27 = sadd.s32 1, %s1025_s25  ;;  %p832_p0 = scmp.ge.s32.totalorder %s1029_s26, 1  ;;  %s1029_s26 = sphi %s1075_s26, %s18_s26   ;;  %s1025_s25 = sphi %s1073_s25, %s1275_s25   ;;  %s1021_s24 = sphi %s1071_s24, %s1274_s24  }
   0x3   : > { %p32_p1 = scmp.ge.s32.totalorder %s30_s27, 2  ;;  %p279_p2 = scmp.lt.s32.totalorder %s1029_s26, 3 }
   0x5   : > { %s1277_s27 = smov (%p32_p1, %s30_s27), 0  ;;  %p280_p3 = pnand %p832_p0, %p279_p2 }
   0x6   : > { %p335_p4 = scmp.lt.s32.totalorder (!%p280_p3), %s1021_s24, 1 }
   0x7   : > { %283 = sbr.rel (%p280_p3) target bundleno = 256 (0x100), region = 44 }
   0xc   : > { %v423_v0 = vld [vmem:[%s1269_s3 + $0x78] sm:$0xff]  ;;  %v422_v2 = vld [vmem:[%s1269_s3 + $0x70] sm:$0xff]  ;;  %v421_v4 = vld [vmem:[%s1269_s3 + $0x68] sm:$0xff]  ;;  %s1279_s24 = smov (!%p335_p4, %s1021_s24), 1 }
   0xd   : > { %v559_v1 = vld [vmem:[%s1271_s5 + $0x78] sm:$0xff]  ;;  %895 = vmatprep.subr.mxu0 %v423_v0  ;;  %v558_v3 = vld [vmem:[%s1271_s5 + $0x70] sm:$0xff]  ;;  %v557_v5 = vld [vmem:[%s1271_s5 + $0x68] sm:$0xff]  ;;  %s1150_s22 = sshll.u32 %s1279_s24, 6  ;;  %s346_s17 = scalar_lea.vmem %s1267_s1, %s1279_s24 }
   0xe   : > { %939 = vmatprep.subr.mxu1 %v559_v1  ;;  %896 = vmatpush3.msra.mxu0 %v423_v0  ;;  %v420_v6 = vld [vmem:[%s1269_s3 + $0x60] sm:$0xff]  ;;  %v419_v8 = vld [vmem:[%s1269_s3 + $0x58] sm:$0xff]  ;;  %v418_v10 = vld [vmem:[%s1269_s3 + $0x50] sm:$0xff]  ;;  %s1168_s14 = scalar_lea.vmem %s1266_s0, %s1150_s22  ;;  %s349_s10 = scalar_lea.vmem %s1268_s2, %s1279_s24 }
   0xf   : > { %940 = vmatpush3.msra.mxu1 %v559_v1  ;;  %897 = vmatprep.subr.mxu0 %v422_v2  ;;  %v556_v7 = vld [vmem:[%s1271_s5 + $0x60] sm:$0xff]  ;;  %v555_v9 = vld [vmem:[%s1271_s5 + $0x58] sm:$0xff]  ;;  %v554_v11 = vld [vmem:[%s1271_s5 + $0x50] sm:$0xff]  ;;  %s1233_s8 = scalar_lea.vmem %s1273_s7, %s1150_s22  ;;  %s1239_s11 = scalar_lea.vmem %s1272_s6, %s1150_s22 }
  0x10   : > { %941 = vmatprep.subr.mxu1 %v558_v3  ;;  %898 = vmatpush3.msra.mxu0 %v422_v2  ;;  %v417_v12 = vld [vmem:[%s1269_s3 + $0x48] sm:$0xff]  ;;  %v416_v14 = vld [vmem:[%s1269_s3 + $0x40] sm:$0xff]  ;;  %v415_v16 = vld [vmem:[%s1269_s3 + $0x38] sm:$0xff] }
  0x11   : > { %942 = vmatpush3.msra.mxu1 %v558_v3  ;;  %899 = vmatprep.subr.mxu0 %v421_v4  ;;  %v553_v13 = vld [vmem:[%s1271_s5 + $0x48] sm:$0xff]  ;;  %v552_v15 = vld [vmem:[%s1271_s5 + $0x40] sm:$0xff]  ;;  %v551_v17 = vld [vmem:[%s1271_s5 + $0x38] sm:$0xff] }
  0x12   : > { %943 = vmatprep.subr.mxu1 %v557_v5  ;;  %900 = vmatpush3.msra.mxu0 %v421_v4  ;;  %v414_v18 = vld [vmem:[%s1269_s3 + $0x30] sm:$0xff]  ;;  %v413_v20 = vld [vmem:[%s1269_s3 + $0x28] sm:$0xff]  ;;  %v412_v22 = vld [vmem:[%s1269_s3 + $0x20] sm:$0xff] }
  0x13   : > { %944 = vmatpush3.msra.mxu1 %v557_v5  ;;  %901 = vmatprep.subr.mxu0 %v420_v6  ;;  %v550_v19 = vld [vmem:[%s1271_s5 + $0x30] sm:$0xff]  ;;  %v549_v21 = vld [vmem:[%s1271_s5 + $0x28] sm:$0xff]  ;;  %v548_v23 = vld [vmem:[%s1271_s5 + $0x20] sm:$0xff] }
  0x14   : > { %945 = vmatprep.subr.mxu1 %v556_v7  ;;  %902 = vmatpush3.msra.mxu0 %v420_v6  ;;  %v370_v24 = vld [vmem:[%s1168_s14] sm:$0xff]  ;;  %v411_v26 = vld [vmem:[%s1269_s3 + $0x18] sm:$0xff]  ;;  %v371_v28 = vld [vmem:[%s1168_s14 + $0x8] sm:$0xff] }
  0x15   : > { %946 = vmatpush3.msra.mxu1 %v556_v7  ;;  %903 = vmatprep.subr.mxu0 %v419_v8  ;;  %v1181_v25 = vld [vmem:[%s346_s17] ss:$0 sm:$0xff]  ;;  %v547_v27 = vld [vmem:[%s1271_s5 + $0x18] sm:$0xff]  ;;  %v410_v29 = vld [vmem:[%s1269_s3 + $0x10] sm:$0xff] }
  0x16   : > { %947 = vmatprep.subr.mxu1 %v555_v9  ;;  %904 = vmatpush3.msra.mxu0 %v419_v8  ;;  %v546_v30 = vld [vmem:[%s1271_s5 + $0x10] sm:$0xff]  ;;  %v385_v31 = vsub.f32 %v370_v24, %v1181_v25  ;;  %v840_v33 = vld [vmem:[%s349_s10] ss:$0 sm:$0xff]  ;;  %v409_v34 = vld [vmem:[%s1269_s3 + $0x8] sm:$0xff]  ;;  %v386_v36 = vsub.f32 %v371_v28, %v1181_v25 }
  0x17   : > { %948 = vmatpush3.msra.mxu1 %v555_v9  ;;  %905 = vmatprep.subr.mxu0 %v418_v10  ;;  %v372_v32 = vld [vmem:[%s1168_s14 + $0x10] sm:$0xff]  ;;  %v545_v35 = vld [vmem:[%s1271_s5 + $0x8] sm:$0xff]  ;;  %v373_v38 = vld [vmem:[%s1168_s14 + $0x18] sm:$0xff] }
  0x18   : > { %949 = vmatprep.subr.mxu1 %v554_v11  ;;  %906 = vmatpush3.msra.mxu0 %v418_v10  ;;  %v387_v37 = vsub.f32 %v372_v32, %v1181_v25  ;;  %v408_v39 = vld [vmem:[%s1269_s3] sm:$0xff]  ;;  %v400_v41 = vmul.f32 %v840_v33, %v385_v31  ;;  %v401_v43 = vmul.f32 %v840_v33, %v386_v36  ;;  %v375_v47 = vld [vmem:[%s1168_s14 + $0x28] sm:$0xff]  ;;  %v376_v48 = vld [vmem:[%s1168_s14 + $0x30] sm:$0xff] }
  0x19   : > { %950 = vmatpush3.msra.mxu1 %v554_v11  ;;  %907 = vmatprep.subr.mxu0 %v417_v12  ;;  %v544_v40 = vld [vmem:[%s1271_s5] sm:$0xff]  ;;  %v388_v44 = vsub.f32 %v373_v38, %v1181_v25  ;;  %v390_v50 = vsub.f32 %v375_v47, %v1181_v25  ;;  %v391_v52 = vsub.f32 %v376_v48, %v1181_v25  ;;  %v377_v53 = vld [vmem:[%s1168_s14 + $0x38] sm:$0xff] }
  0x1a   : > { %951 = vmatprep.subr.mxu1 %v553_v13  ;;  %908 = vmatpush3.msra.mxu0 %v417_v12  ;;  %v374_v42 = vld [vmem:[%s1168_s14 + $0x20] sm:$0xff]  ;;  %v402_v45 = vmul.f32 %v840_v33, %v387_v37  ;;  %v392_v55 = vsub.f32 %v377_v53, %v1181_v25 }
  0x1b   : > { %952 = vmatpush3.msra.mxu1 %v553_v13  ;;  %909 = vmatprep.subr.mxu0 %v416_v14  ;;  %v389_v46 = vsub.f32 %v374_v42, %v1181_v25  ;;  %v403_v49 = vmul.f32 %v840_v33, %v388_v44  ;;  %v405_v54 = vmul.f32 %v840_v33, %v390_v50  ;;  %v841_v58 = vld [vmem:[%s1270_s4] ss:$0 sm:$0xff] }
  0x1c   : > { %953 = vmatprep.subr.mxu1 %v552_v15  ;;  %910 = vmatpush3.msra.mxu0 %v416_v14  ;;  %v406_v56 = vmul.f32 %v840_v33, %v391_v52  ;;  %v407_v57 = vmul.f32 %v840_v33, %v392_v55 }
  0x1d   : > { %954 = vmatpush3.msra.mxu1 %v552_v15  ;;  %911 = vmatprep.subr.mxu0 %v415_v16  ;;  %v404_v51 = vmul.f32 %v840_v33, %v389_v46 }
  0x1e   : > { %955 = vmatprep.subr.mxu1 %v551_v17  ;;  %912 = vmatpush3.msra.mxu0 %v415_v16 }
  0x1f   : > { %956 = vmatpush3.msra.mxu1 %v551_v17  ;;  %913 = vmatprep.subr.mxu0 %v414_v18 }
  0x20   : > { %957 = vmatprep.subr.mxu1 %v550_v19  ;;  %914 = vmatpush3.msra.mxu0 %v414_v18 }
  0x21   : > { %958 = vmatpush3.msra.mxu1 %v550_v19  ;;  %915 = vmatprep.subr.mxu0 %v413_v20 }
  0x22   : > { %959 = vmatprep.subr.mxu1 %v549_v21  ;;  %916 = vmatpush3.msra.mxu0 %v413_v20 }
  0x23   : > { %960 = vmatpush3.msra.mxu1 %v549_v21  ;;  %917 = vmatprep.subr.mxu0 %v412_v22 }
  0x24   : > { %961 = vmatprep.subr.mxu1 %v548_v23  ;;  %918 = vmatpush3.msra.mxu0 %v412_v22 }
  0x25   : > { %962 = vmatpush3.msra.mxu1 %v548_v23  ;;  %919 = vmatprep.subr.mxu0 %v411_v26 }
  0x26   : > { %963 = vmatprep.subr.mxu1 %v547_v27  ;;  %920 = vmatpush3.msra.mxu0 %v411_v26 }
  0x27   : > { %964 = vmatpush3.msra.mxu1 %v547_v27  ;;  %921 = vmatprep.subr.mxu0 %v410_v29 }
  0x28   : > { %965 = vmatprep.subr.mxu1 %v546_v30  ;;  %922 = vmatpush3.msra.mxu0 %v410_v29 }
  0x29   : > { %966 = vmatpush3.msra.mxu1 %v546_v30  ;;  %923 = vmatprep.subr.mxu0 %v409_v34 }
  0x2a   : > { %967 = vmatprep.subr.mxu1 %v545_v35  ;;  %924 = vmatpush3.msra.mxu0 %v409_v34 }
  0x2b   : > { %968 = vmatpush3.msra.mxu1 %v545_v35  ;;  %925 = vmatprep.subr.mxu0 %v408_v39 }
  0x2c   : > { %969 = vmatprep.subr.mxu1 %v544_v40  ;;  %926 = vmatpush3.msra.mxu0 %v408_v39 }
  0x2d   : > { %927 = vmatprep.mubr.f32.mxu0 %v400_v41  ;;  %970 = vmatpush3.msra.mxu1 %v544_v40 }
  0x2e   : > { %971 = vmatprep.mubr.f32.mxu1 %v370_v24  ;;  %928 = vmatmul.mubr.f32.vlgmr.msra.gmra.mxu0 %v401_v43 }
  0x2f   : > { %972 = vmatmul.mubr.f32.vlgmr.msra.gmra.mxu1 %v371_v28  ;;  %930 = vmatprep.mubr.f32.mxu0 %v402_v45 }
  0x30   : > { %974 = vmatprep.mubr.f32.mxu1 %v372_v32 }
  0x32   : > { %931 = vmatmul.mubr.f32.gmra.mxu0 %v403_v49 }
  0x33   : > { %975 = vmatmul.mubr.f32.gmra.mxu1 %v373_v38  ;;  %933 = vmatprep.mubr.f32.mxu0 %v404_v51 }
  0x34   : > { %977 = vmatprep.mubr.f32.mxu1 %v374_v42 }
  0x36   : > { %934 = vmatmul.mubr.f32.gmra.mxu0 %v405_v54 }
  0x37   : > { %978 = vmatmul.mubr.f32.gmra.mxu1 %v375_v47  ;;  %936 = vmatprep.mubr.f32.mxu0 %v406_v56 }
  0x38   : > { %980 = vmatprep.mubr.f32.mxu1 %v376_v48 }
  0x3a   : > { %937 = vmatmul.mubr.f32.gmra.mxu0 %v407_v57 }
  0x3b   : > { %981 = vmatmul.mubr.f32.gmra.mxu1 %v377_v53 }
  0xee   : > { %v929_v59 = vpop.f32.mrf.mxu0 }
  0xef   : > { %v973_v60 = vpop.f32.mrf.mxu1  ;;  %v503_v61 = vadd.f32 %v929_v59, %v841_v58 }
  0xf0   : > { %666 = vst [vmem:[%s1233_s8 + $0x8] sm:$0xff] %v973_v60  ;;  %v497_v62 = vpop.f32.mrf.mxu0 }
  0xf1   : > { %v626_v63 = vpop.f32.mrf.mxu1  ;;  %537 = vst [vmem:[%s1239_s11 + $0x8] sm:$0xff] %v503_v61  ;;  %v498_v0 = vadd.f32 %v841_v58, %v497_v62 }
  0xf2   : > { %665 = vst [vmem:[%s1233_s8] sm:$0xff] %v626_v63  ;;  %v932_v1 = vpop.f32.mrf.mxu0 }
  0xf3   : > { %v976_v2 = vpop.f32.mrf.mxu1  ;;  %536 = vst [vmem:[%s1239_s11] sm:$0xff] %v498_v0  ;;  %v513_v3 = vadd.f32 %v932_v1, %v841_v58 }
  0xf4   : > { %668 = vst [vmem:[%s1233_s8 + $0x18] sm:$0xff] %v976_v2  ;;  %v507_v4 = vpop.f32.mrf.mxu0 }
  0xf5   : > { %v636_v5 = vpop.f32.mrf.mxu1  ;;  %539 = vst [vmem:[%s1239_s11 + $0x18] sm:$0xff] %v513_v3  ;;  %v508_v6 = vadd.f32 %v841_v58, %v507_v4 }
  0xf6   : > { %667 = vst [vmem:[%s1233_s8 + $0x10] sm:$0xff] %v636_v5  ;;  %v935_v7 = vpop.f32.mrf.mxu0 }
  0xf7   : > { %v979_v8 = vpop.f32.mrf.mxu1  ;;  %538 = vst [vmem:[%s1239_s11 + $0x10] sm:$0xff] %v508_v6  ;;  %v523_v9 = vadd.f32 %v935_v7, %v841_v58 }
  0xf8   : > { %670 = vst [vmem:[%s1233_s8 + $0x28] sm:$0xff] %v979_v8  ;;  %v517_v10 = vpop.f32.mrf.mxu0 }
  0xf9   : > { %v646_v11 = vpop.f32.mrf.mxu1  ;;  %541 = vst [vmem:[%s1239_s11 + $0x28] sm:$0xff] %v523_v9  ;;  %v518_v12 = vadd.f32 %v841_v58, %v517_v10 }
  0xfa   : > { %669 = vst [vmem:[%s1233_s8 + $0x20] sm:$0xff] %v646_v11  ;;  %v938_v13 = vpop.f32.mrf.mxu0 }
  0xfb   : > { %v982_v14 = vpop.f32.mrf.mxu1  ;;  %540 = vst [vmem:[%s1239_s11 + $0x20] sm:$0xff] %v518_v12  ;;  %v533_v15 = vadd.f32 %v938_v13, %v841_v58 }
  0xfc   : > { %672 = vst [vmem:[%s1233_s8 + $0x38] sm:$0xff] %v982_v14  ;;  %v527_v16 = vpop.f32.mrf.mxu0 }
  0xfd   : > { %v656_v17 = vpop.f32.mrf.mxu1  ;;  %543 = vst [vmem:[%s1239_s11 + $0x38] sm:$0xff] %v533_v15  ;;  %v528_v18 = vadd.f32 %v841_v58, %v527_v16 }
  0xfe   : > { %671 = vst [vmem:[%s1233_s8 + $0x30] sm:$0xff] %v656_v17 }
  0xff   : > { %542 = vst [vmem:[%s1239_s11 + $0x30] sm:$0xff] %v528_v18 }
 0x100 PF: > { %s18_s26 = sadd.s32 1, %s1029_s26   ;;  %s1274_s24 = smov %s1025_s25 }
 0x101   : > { %p15_p5 = scmp.ge.s32.totalorder %s18_s26, 4   ;;  %s1275_s25 = smov %s1277_s27 }
 0x103   :  { %17 = sbr.rel (!%p15_p5) target bundleno = 2 (0x2), region = 92 }

// kernel: sanet_forward.3
= control target key start
LH: loop header
LB: loop body
LE: loop exit
PB: predicated region body
PF: predicated region fallthrough
CT: control target
= control target key end

     0   :  { %s1789_s27 = smov 0   ;;  %s1791_s28 = smov 0   ;;  %s2180_s0 = inlined_call_operand.vmem [shape: f32[2,64,128], index: 0, kind: input, shape index: {}]   ;;  %s2181_s1 = inlined_call_operand.vmem [shape: f32[2,1,128], index: 1, kind: input, shape index: {}]   ;;  %s2182_s2 = inlined_call_operand.vmem [shape: f32[2,1,128], index: 2, kind: input, shape index: {}]   ;;  %s2183_s3 = inlined_call_operand.vmem [shape: f32[128,128], index: 3, kind: input, shape index: {}]   ;;  %s2184_s4 = inlined_call_operand.vmem [shape: f32[1,128], index: 4, kind: input, shape index: {}]   ;;  %s2185_s5 = inlined_call_operand.vmem [shape: f32[1,128], index: 5, kind: input, shape index: {}]   ;;  %s2186_s6 = inlined_call_operand.vmem [shape: f32[2,64,128], index: 6, kind: input, shape index: {}]   ;;  %s2187_s7 = inlined_call_operand.vmem [shape: f32[2,64,128], index: 7, kind: input, shape index: {}]   ;;  %s2188_s8 = inlined_call_operand.vmem [shape: f32[2,64,128], index: 8, kind: output, shape index: {}]  }
   0x1   :  { %s1793_s29 = smov 0  }
   0x2 LB: > { %s37_s30 = sadd.s32 1, %s1735_s28  ;;  %p1441_p0 = scmp.ge.s32.totalorder %s1739_s29, 1  ;;  %s1739_s29 = sphi %s1793_s29, %s18_s29   ;;  %s1735_s28 = sphi %s1791_s28, %s2190_s28   ;;  %s1731_s27 = sphi %s1789_s27, %s2189_s27  }
   0x3   : > { %p39_p1 = scmp.ge.s32.totalorder %s37_s30, 2  ;;  %p340_p2 = scmp.lt.s32.totalorder %s1739_s29, 3 }
   0x5   : > { %s2192_s30 = smov (%p39_p1, %s37_s30), 0  ;;  %p341_p3 = pnand %p1441_p0, %p340_p2 }
   0x6   : > { %p407_p4 = scmp.lt.s32.totalorder (!%p341_p3), %s1731_s27, 1 }
   0x7   : > { %344 = sbr.rel (%p341_p3) target bundleno = 1053 (0x41d), region = 52 }
   0xc   : > { %v509_v0 = vld [vmem:[%s2183_s3 + $0x78] sm:$0xff]  ;;  %v508_v1 = vld [vmem:[%s2183_s3 + $0x70] sm:$0xff]  ;;  %v507_v2 = vld [vmem:[%s2183_s3 + $0x68] sm:$0xff]  ;;  %s2194_s27 = smov (!%p407_p4, %s1731_s27), 1  ;;  %vm630_vm0 = vcmask 7168   ;;  %vm784_vm1 = vcmask 523264  }
   0xd   : > { %1524 = vmatprep.subr.mxu0 %v509_v0  ;;  %v506_v3 = vld [vmem:[%s2183_s3 + $0x60] sm:$0xff]  ;;  %s1819_s17 = sshll.u32 %s2194_s27, 6  ;;  %s418_s20 = scalar_lea.vmem %s2181_s1, %s2194_s27  ;;  %v505_v5 = vld [vmem:[%s2183_s3 + $0x58] sm:$0xff]  ;;  %v504_v9 = vld [vmem:[%s2183_s3 + $0x50] sm:$0xff] }
   0xe   : > { %1525 = vmatpush3.msra.mxu0 %v509_v0  ;;  %s1828_s23 = scalar_lea.vmem %s2180_s0, %s1819_s17  ;;  %s421_s26 = scalar_lea.vmem %s2182_s2, %s2194_s27  ;;  %v1833_v4 = vld [vmem:[%s418_s20] ss:$0 sm:$0xff]  ;;  %v503_v12 = vld [vmem:[%s2183_s3 + $0x48] sm:$0xff]  ;;  %v501_v15 = vld [vmem:[%s2183_s3 + $0x38] sm:$0xff] }
   0xf   : > { %1526 = vmatprep.subr.mxu0 %v508_v1  ;;  %v1839_v6 = vld [vmem:[%s1828_s23] sm:$0xff]  ;;  %s1847_s13 = scalar_lea.vmem %s2186_s6, %s1819_s17  ;;  %v500_v17 = vld [vmem:[%s2183_s3 + $0x30] sm:$0xff]  ;;  %v499_v18 = vld [vmem:[%s2183_s3 + $0x28] sm:$0xff]  ;;  %s1997_s22 = scalar_lea.vmem %s2187_s7, %s1819_s17 }
  0x10   : > { %1527 = vmatpush3.msra.mxu0 %v508_v1  ;;  %v1841_v7 = vld [vmem:[%s421_s26] ss:$0 sm:$0xff]  ;;  %v471_v8 = vsub.f32 %v1839_v6, %v1833_v4  ;;  %v670_v11 = vld [vmem:[%s1847_s13 + $0x38] sm:$0xff]  ;;  %v669_v13 = vld [vmem:[%s1847_s13 + $0x30] sm:$0xff]  ;;  %s2146_s10 = scalar_lea.vmem %s2188_s8, %s1819_s17 }
  0x11   : > { %1528 = vmatprep.subr.mxu0 %v507_v2  ;;  %v502_v14 = vld [vmem:[%s2183_s3 + $0x40] sm:$0xff]  ;;  %1568 = vmatprep.subr.mxu1 %v670_v11  ;;  %v668_v16 = vld [vmem:[%s1847_s13 + $0x28] sm:$0xff]  ;;  %v497_v21 = vld [vmem:[%s2183_s3 + $0x18] sm:$0xff] }
  0x12   : > { %1529 = vmatpush3.msra.mxu0 %v507_v2  ;;  %v486_v10 = vmul.f32 %v1841_v7, %v471_v8  ;;  %1569 = vmatpush3.xpose.msra.mxu1 %v670_v11  ;;  %v667_v19 = vld [vmem:[%s1847_s13 + $0x20] sm:$0xff]  ;;  %v1881_v22 = vld [vmem:[%s1828_s23 + $0x8] sm:$0xff]  ;;  %v1884_v23 = vld [vmem:[%s1828_s23 + $0x10] sm:$0xff] }
  0x13   : > { %1530 = vmatprep.subr.mxu0 %v506_v3  ;;  %1570 = vmatprep.subr.mxu1 %v669_v13  ;;  %v498_v20 = vld [vmem:[%s2183_s3 + $0x20] sm:$0xff]  ;;  %v666_v24 = vld [vmem:[%s1847_s13 + $0x18] sm:$0xff]  ;;  %v496_v25 = vld [vmem:[%s2183_s3 + $0x10] sm:$0xff]  ;;  %v472_v26 = vsub.f32 %v1881_v22, %v1833_v4  ;;  %v473_v28 = vsub.f32 %v1884_v23, %v1833_v4 }
  0x14   : > { %1531 = vmatpush3.msra.mxu0 %v506_v3  ;;  %1556 = vmatprep.mubr.f32.mxu0 %v486_v10  ;;  %v495_v27 = vld [vmem:[%s2183_s3 + $0x8] sm:$0xff]  ;;  %v1898_v29 = vld [vmem:[%s1828_s23 + $0x18] sm:$0xff]  ;;  %v1901_v30 = vld [vmem:[%s1828_s23 + $0x20] sm:$0xff]  ;;  %v1741_v3 = vmov -inf  }
  0x15   : > { %1532 = vmatprep.subr.mxu0 %v505_v5  ;;  %v665_v31 = vld [vmem:[%s1847_s13 + $0x10] sm:$0xff]  ;;  %v494_v32 = vld [vmem:[%s2183_s3] sm:$0xff]  ;;  %v487_v33 = vmul.f32 %v1841_v7, %v472_v26  ;;  %v474_v34 = vsub.f32 %v1898_v29, %v1833_v4  ;;  %v488_v35 = vmul.f32 %v1841_v7, %v473_v28  ;;  %v475_v36 = vsub.f32 %v1901_v30, %v1833_v4  ;;  %v1914_v37 = vld [vmem:[%s1828_s23 + $0x28] sm:$0xff] }
  0x16   : > { %1533 = vmatpush3.msra.mxu0 %v505_v5  ;;  %1571 = vmatpush3.xpose.msra.mxu1 %v669_v13  ;;  %v1917_v38 = vld [vmem:[%s1828_s23 + $0x30] sm:$0xff]  ;;  %v664_v39 = vld [vmem:[%s1847_s13 + $0x8] sm:$0xff]  ;;  %v476_v41 = vsub.f32 %v1914_v37, %v1833_v4  ;;  %v1927_v44 = vld [vmem:[%s1828_s23 + $0x38] sm:$0xff]  ;;  %632 = vst.msk [vmem:[#allocation3 + $0x8] sm:$0xff] %vm630_vm0, %v1741_v3 }
  0x17   : > { %1534 = vmatprep.subr.mxu0 %v504_v9  ;;  %1572 = vmatprep.subr.mxu1 %v668_v16  ;;  %v489_v40 = vmul.f32 %v1841_v7, %v474_v34  ;;  %v490_v42 = vmul.f32 %v1841_v7, %v475_v36  ;;  %v477_v43 = vsub.f32 %v1917_v38, %v1833_v4  ;;  %v663_v49 = vld [vmem:[%s1847_s13] sm:$0xff]  ;;  %v1025_v34 = vld [vmem:[%s1997_s22 + $0x38] sm:$0xff]  ;;  %v1024_v36 = vld [vmem:[%s1997_s22 + $0x30] sm:$0xff] }
  0x18   : > { %1535 = vmatpush3.msra.mxu0 %v504_v9  ;;  %v491_v45 = vmul.f32 %v1841_v7, %v476_v41  ;;  %v478_v46 = vsub.f32 %v1927_v44, %v1833_v4  ;;  %v1452_v51 = vld [vmem:[%s2184_s4] ss:$0 sm:$0xff]  ;;  %631 = vst.msk [vmem:[#allocation3] sm:$0xff] %vm630_vm0, %v1741_v3  ;;  %633 = vst.msk [vmem:[#allocation3 + $0x10] sm:$0xff] %vm630_vm0, %v1741_v3 }
  0x19   : > { %1536 = vmatprep.subr.mxu0 %v503_v12  ;;  %v492_v47 = vmul.f32 %v1841_v7, %v477_v43  ;;  %634 = vst.msk [vmem:[#allocation3 + $0x18] sm:$0xff] %vm630_vm0, %v1741_v3  ;;  %635 = vst.msk [vmem:[#allocation3 + $0x20] sm:$0xff] %vm630_vm0, %v1741_v3  ;;  %v1022_v41 = vld [vmem:[%s1997_s22 + $0x20] sm:$0xff] }
  0x1a   : > { %1537 = vmatpush3.msra.mxu0 %v503_v12  ;;  %1573 = vmatpush3.xpose.msra.mxu1 %v668_v16  ;;  %v493_v48 = vmul.f32 %v1841_v7, %v478_v46  ;;  %636 = vst.msk [vmem:[#allocation3 + $0x28] sm:$0xff] %vm630_vm0, %v1741_v3  ;;  %637 = vst.msk [vmem:[#allocation3 + $0x30] sm:$0xff] %vm630_vm0, %v1741_v3  ;;  %v1742_v16 = vmov 0   ;;  %v1021_v46 = vld [vmem:[%s1997_s22 + $0x18] sm:$0xff] }
  0x1b   : > { %1538 = vmatprep.subr.mxu0 %v502_v14  ;;  %1574 = vmatprep.subr.mxu1 %v667_v19  ;;  %638 = vst.msk [vmem:[#allocation3 + $0x38] sm:$0xff] %vm630_vm0, %v1741_v3 }
  0x1c   : > { %1539 = vmatpush3.msra.mxu0 %v502_v14  ;;  %1668 = vset.pattern.permute.xlu1 %v1742_v16 }
  0x1d   : > { %1540 = vmatprep.subr.mxu0 %v501_v15  ;;  %1667 = vset.pattern.permute.xlu0 %v1742_v16 }
  0x1e   : > { %1541 = vmatpush3.msra.mxu0 %v501_v15  ;;  %1575 = vmatpush3.xpose.msra.mxu1 %v667_v19 }
  0x1f   : > { %1542 = vmatprep.subr.mxu0 %v500_v17  ;;  %1576 = vmatprep.subr.mxu1 %v666_v24 }
  0x20   : > { %1543 = vmatpush3.msra.mxu0 %v500_v17  ;;  %v2018_v43 = vld [vmem:[#allocation3 + $0x20] sm:$0xff] }
  0x21   : > { %1544 = vmatprep.subr.mxu0 %v499_v18 }
  0x22   : > { %1545 = vmatpush3.msra.mxu0 %v499_v18  ;;  %1577 = vmatpush3.xpose.msra.mxu1 %v666_v24  ;;  %v1743_v24 = vmov 0.0  }
  0x23   : > { %1546 = vmatprep.subr.mxu0 %v498_v20  ;;  %1578 = vmatprep.subr.mxu1 %v665_v31  ;;  %640 = vst.msk [vmem:[#allocation4 + $0x8] sm:$0xff] %vm630_vm0, %v1743_v24  ;;  %639 = vst.msk [vmem:[#allocation4] sm:$0xff] %vm630_vm0, %v1743_v24 }
  0x24   : > { %1547 = vmatpush3.msra.mxu0 %v498_v20  ;;  %641 = vst.msk [vmem:[#allocation4 + $0x10] sm:$0xff] %vm630_vm0, %v1743_v24  ;;  %642 = vst.msk [vmem:[#allocation4 + $0x18] sm:$0xff] %vm630_vm0, %v1743_v24 }
  0x25   : > { %1548 = vmatprep.subr.mxu0 %v497_v21  ;;  %643 = vst.msk [vmem:[#allocation4 + $0x20] sm:$0xff] %vm630_vm0, %v1743_v24  ;;  %644 = vst.msk [vmem:[#allocation4 + $0x28] sm:$0xff] %vm630_vm0, %v1743_v24 }
  0x26   : > { %1549 = vmatpush3.msra.mxu0 %v497_v21  ;;  %1579 = vmatpush3.xpose.msra.mxu1 %v665_v31  ;;  %645 = vst.msk [vmem:[#allocation4 + $0x30] sm:$0xff] %vm630_vm0, %v1743_v24  ;;  %646 = vst.msk [vmem:[#allocation4 + $0x38] sm:$0xff] %vm630_vm0, %v1743_v24 }
  0x27   : > { %1550 = vmatprep.subr.mxu0 %v496_v25  ;;  %1580 = vmatprep.subr.mxu1 %v664_v39 }
  0x28   : > { %1551 = vmatpush3.msra.mxu0 %v496_v25  ;;  %v1986_v25 = vld [vmem:[#allocation3 + $0x8] sm:$0xff] }
  0x29   : > { %1552 = vmatprep.subr.mxu0 %v495_v27 }
  0x2a   : > { %1553 = vmatpush3.msra.mxu0 %v495_v27  ;;  %1581 = vmatpush3.xpose.msra.mxu1 %v664_v39  ;;  %v1988_v27 = vld [vmem:[#allocation3] sm:$0xff]  ;;  %v1023_v39 = vld [vmem:[%s1997_s22 + $0x28] sm:$0xff] }
  0x2b   : > { %1554 = vmatprep.subr.mxu0 %v494_v32  ;;  %1582 = vmatprep.subr.mxu1 %v663_v49 }
  0x2c   : > { %1555 = vmatpush3.msra.mxu0 %v494_v32 }
  0x2d   : > { %1557 = vmatmul.mubr.f32.vlgmr.msra.gmra.mxu0 %v487_v33  ;;  %1596 = vmatprep.subr.mxu0 %v1025_v34 }
  0x2e   : > { %1559 = vmatprep.mubr.f32.mxu0 %v488_v35  ;;  %1583 = vmatpush3.xpose.msra.mxu1 %v663_v49 }
  0x2f   : > { %1624 = vmatprep.subr.mxu1 %v1025_v34  ;;  %1597 = vmatpush3.msra.mxu0 %v1025_v34 }
  0x30   : > { %1598 = vmatprep.subr.mxu0 %v1024_v36 }
  0x31   : > { %1560 = vmatmul.mubr.f32.gmra.mxu0 %v489_v40  ;;  %v2015_v40 = vld [vmem:[#allocation3 + $0x28] sm:$0xff] }
  0x32   : > { %1562 = vmatprep.mubr.f32.mxu0 %v490_v42  ;;  %1599 = vmatpush3.msra.mxu0 %v1024_v36 }
  0x33   : > { %1600 = vmatprep.subr.mxu0 %v1023_v39 }
  0x34   : > { %1601 = vmatpush3.msra.mxu0 %v1023_v39 }
  0x35   : > { %1563 = vmatmul.mubr.f32.gmra.mxu0 %v491_v45  ;;  %1602 = vmatprep.subr.mxu0 %v1022_v41 }
  0x36   : > { %1565 = vmatprep.mubr.f32.mxu0 %v492_v47  ;;  %1603 = vmatpush3.msra.mxu0 %v1022_v41 }
  0x37   : > { %1604 = vmatprep.subr.mxu0 %v1021_v46 }
  0x38   : > { %1605 = vmatpush3.msra.mxu0 %v1021_v46 }
  0x39   : > { %1566 = vmatmul.mubr.f32.gmra.mxu0 %v493_v48 }
  0xed   : > { %v1558_v50 = vpop.f32.mrf.mxu0 }
  0xee   : > { %v589_v54 = vadd.f32 %v1558_v50, %v1452_v51  ;;  %v1020_v50 = vld [vmem:[%s1997_s22 + $0x10] sm:$0xff] }
  0xef   : > { %v583_v52 = vpop.f32.mrf.mxu0  ;;  %1606 = vmatprep.subr.mxu0 %v1020_v50 }
  0xf0   : > { %v584_v53 = vadd.f32 %v1452_v51, %v583_v52  ;;  %v2034_v52 = vld [vmem:[#allocation3 + $0x30] sm:$0xff]  ;;  %1607 = vmatpush3.msra.mxu0 %v1020_v50 }
  0xf1   : > { %v1561_v55 = vpop.f32.mrf.mxu0 }
  0xf2   : > { %1584 = vmatprep.mubr.f32.mxu1 %v584_v53  ;;  %v599_v58 = vadd.f32 %v1561_v55, %v1452_v51 }
  0xf3   : > { %v593_v56 = vpop.f32.mrf.mxu0  ;;  %1585 = vmatmul.mubr.f32.vlgmr.msra.gmra.mxu1 %v589_v54  ;;  %v1019_v54 = vld [vmem:[%s1997_s22 + $0x8] sm:$0xff] }
  0xf4   : > { %v594_v57 = vadd.f32 %v1452_v51, %v593_v56  ;;  %1632 = vmatpush3.msra.mxu1 %v1025_v34  ;;  %1608 = vmatprep.subr.mxu0 %v1019_v54 }
  0xf5   : > { %v1564_v59 = vpop.f32.mrf.mxu0  ;;  %1625 = vmatprep.subr.mxu1 %v1024_v36  ;;  %1609 = vmatpush3.msra.mxu0 %v1019_v54 }
  0xf6   : > { %1587 = vmatprep.mubr.f32.mxu1 %v594_v57  ;;  %v609_v62 = vadd.f32 %v1564_v59, %v1452_v51  ;;  %1633 = vmatpush3.msra.mxu1 %v1024_v36  ;;  %v2047_v59 = vld [vmem:[#allocation3 + $0x18] sm:$0xff] }
  0xf7   : > { %v603_v60 = vpop.f32.mrf.mxu0  ;;  %1588 = vmatmul.mubr.f32.gmra.mxu1 %v599_v58  ;;  %1626 = vmatprep.subr.mxu1 %v1023_v39 }
  0xf8   : > { %v604_v61 = vadd.f32 %v1452_v51, %v603_v60  ;;  %1634 = vmatpush3.msra.mxu1 %v1023_v39  ;;  %v2049_v60 = vld [vmem:[#allocation3 + $0x38] sm:$0xff] }
  0xf9   : > { %v1567_v63 = vpop.f32.mrf.mxu0  ;;  %1627 = vmatprep.subr.mxu1 %v1022_v41 }
  0xfa   : > { %1590 = vmatprep.mubr.f32.mxu1 %v604_v61  ;;  %v619_v0 = vadd.f32 %v1567_v63, %v1452_v51  ;;  %1635 = vmatpush3.msra.mxu1 %v1022_v41  ;;  %v1018_v63 = vld [vmem:[%s1997_s22] sm:$0xff] }
  0xfb   : > { %1591 = vmatmul.mubr.f32.gmra.mxu1 %v609_v62  ;;  %v613_v1 = vpop.f32.mrf.mxu0  ;;  %1628 = vmatprep.subr.mxu1 %v1021_v46 }
  0xfc   : > { %v614_v2 = vadd.f32 %v1452_v51, %v613_v1  ;;  %v2032_v51 = vld [vmem:[#allocation3 + $0x10] sm:$0xff]  ;;  %1636 = vmatpush3.msra.mxu1 %v1021_v46  ;;  %1610 = vmatprep.subr.mxu0 %v1018_v63 }
  0xfd   : > { %1629 = vmatprep.subr.mxu1 %v1020_v50  ;;  %1611 = vmatpush3.msra.mxu0 %v1018_v63 }
  0xfe   : > { %1593 = vmatprep.mubr.f32.mxu1 %v614_v2  ;;  %1637 = vmatpush3.msra.mxu1 %v1020_v50 }
  0xff   : > { %1594 = vmatmul.mubr.f32.gmra.mxu1 %v619_v0  ;;  %1630 = vmatprep.subr.mxu1 %v1019_v54 }
 0x100   : > { %1638 = vmatpush3.msra.mxu1 %v1019_v54 }
 0x101   : > { %1631 = vmatprep.subr.mxu1 %v1018_v63 }
 0x102   : > { %1639 = vmatpush3.msra.mxu1 %v1018_v63 }
 0x1b3   : > { %v1946_v4 = vpop.f32.mrf.mxu1 }
 0x1b4   : > { %v788_v5 = vsel %vm784_vm1, %v1946_v4, -inf }
 0x1b5   : > { %789 = vmax.xlane.f32.xlu1 %v788_v5  ;;  %v1950_v7 = vpop.f32.mrf.mxu1 }
 0x1b6   : > { %v785_v8 = vsel %vm784_vm1, %v1950_v7, -inf }
 0x1b7   : > { %786 = vmax.xlane.f32.xlu0 %v785_v8  ;;  %v1954_v9 = vpop.f32.mrf.mxu1 }
 0x1b8   : > { %v794_v21 = vsel %vm784_vm1, %v1954_v9, -inf }
 0x1b9   : > { %v1956_v10 = vpop.f32.mrf.mxu1 }
 0x1ba   : > { %v791_v18 = vsel %vm784_vm1, %v1956_v10, -inf }
 0x1bb   : > { %v1958_v11 = vpop.f32.mrf.mxu1 }
 0x1bc   : > { %v800_v12 = vsel %vm784_vm1, %v1958_v11, -inf }
 0x1bd   : > { %801 = vmax.xlane.f32.xlu1 %v800_v12  ;;  %v1962_v13 = vpop.f32.mrf.mxu1 }
 0x1be   : > { %v797_v14 = vsel %vm784_vm1, %v1962_v13, -inf }
 0x1bf   : > { %798 = vmax.xlane.f32.xlu0 %v797_v14  ;;  %v1966_v15 = vpop.f32.mrf.mxu1 }
 0x1c0   : > { %v806_v20 = vsel %vm784_vm1, %v1966_v15, -inf }
 0x1c1   : > { %v1968_v17 = vpop.f32.mrf.mxu1 }
 0x1c2   : > { %v803_v19 = vsel %vm784_vm1, %v1968_v17, -inf }
 0x1c3   : > { %792 = vmax.xlane.f32.xlu0 %v791_v18  ;;  %804 = vmax.xlane.f32.xlu1 %v803_v19 }
 0x1c7   : > { %795 = vmax.xlane.f32.xlu0 %v794_v21  ;;  %807 = vmax.xlane.f32.xlu1 %v806_v20 }
 0x23e   : > { %v790_v26 = vpop.xlane.xlu1 %789 }
 0x23f   : > { %v1991_v28 = vmax.f32 %v1986_v25, %v790_v26 }
 0x240   : > { %v787_v31 = vpop.xlane.xlu0 %786 }
 0x241   : > { %v818_v32 = vsub.f32 %v1986_v25, %v1991_v28  ;;  %1172 = vst.msk [vmem:[#allocation3 + $0x8] sm:$0xff] %vm630_vm0, %v1991_v28  ;;  %v2004_v33 = vmax.f32 %v1988_v27, %v787_v31  ;;  %848 = vperm.xlu1 %1668, %v1991_v28  }
 0x243   : > { %v817_v35 = vsub.f32 %v1988_v27, %v2004_v33  ;;  %1171 = vst.msk [vmem:[#allocation3] sm:$0xff] %vm630_vm0, %v2004_v33  ;;  %843 = vperm.xlu0 %1667, %v2004_v33   ;;  %v905_v33 = vld [vmem:[#allocation4] sm:$0xff] }
 0x246   : > { %v802_v42 = vpop.xlane.xlu1 %801 }
 0x247   : > { %v2021_v45 = vmax.f32 %v2015_v40, %v802_v42 }
 0x248   : > { %v799_v47 = vpop.xlane.xlu0 %798 }
 0x249   : > { %v822_v48 = vsub.f32 %v2015_v40, %v2021_v45  ;;  %1176 = vst.msk [vmem:[#allocation3 + $0x28] sm:$0xff] %vm630_vm0, %v2021_v45  ;;  %v2029_v49 = vmax.f32 %v2018_v43, %v799_v47  ;;  %v908_v40 = vld [vmem:[#allocation4 + $0x18] sm:$0xff] }
 0x24b   : > { %v821_v53 = vsub.f32 %v2018_v43, %v2029_v49  ;;  %1175 = vst.msk [vmem:[#allocation3 + $0x20] sm:$0xff] %vm630_vm0, %v2029_v49 }
 0x24c   : > { %v793_v55 = vpop.xlane.xlu0 %792  ;;  %v805_v56 = vpop.xlane.xlu1 %804 }
 0x24d   : > { %v2042_v57 = vmax.f32 %v2032_v51, %v793_v55  ;;  %v2045_v58 = vmax.f32 %v2034_v52, %v805_v56 }
 0x24f   : > { %v819_v61 = vsub.f32 %v2032_v51, %v2042_v57  ;;  %1173 = vst.msk [vmem:[#allocation3 + $0x10] sm:$0xff] %vm630_vm0, %v2042_v57  ;;  %v823_v62 = vsub.f32 %v2034_v52, %v2045_v58  ;;  %1177 = vst.msk [vmem:[#allocation3 + $0x30] sm:$0xff] %vm630_vm0, %v2045_v58  ;;  %v833_v51 = vmul.f32 1.442695, %v821_v53 }
 0x250   : > { %v796_v0 = vpop.xlane.xlu0 %795  ;;  %v808_v1 = vpop.xlane.xlu1 %807 }
 0x251   : > { %v2061_v2 = vmax.f32 %v2047_v59, %v796_v0  ;;  %v2064_v3 = vmax.f32 %v2049_v60, %v808_v1  ;;  %v829_v25 = vmul.f32 1.442695, %v819_v61  ;;  %v837_v61 = vmul.f32 1.442695, %v823_v62 }
 0x253   : > { %v820_v5 = vsub.f32 %v2047_v59, %v2061_v2  ;;  %1174 = vst.msk [vmem:[#allocation3 + $0x18] sm:$0xff] %vm630_vm0, %v2061_v2  ;;  %858 = vperm.xlu1 %1668, %v2061_v2   ;;  %v824_v8 = vsub.f32 %v2049_v60, %v2064_v3  ;;  %1178 = vst.msk [vmem:[#allocation3 + $0x38] sm:$0xff] %vm630_vm0, %v2064_v3  ;;  %v909_v60 = vld [vmem:[#allocation4 + $0x20] sm:$0xff] }
 0x255   : > { %v831_v27 = vmul.f32 1.442695, %v820_v5 }
 0x257   : > { %853 = vperm.xlu1 %1668, %v2042_v57  }
 0x25b   : > { %868 = vperm.xlu1 %1668, %v2021_v45   ;;  %v839_v45 = vmul.f32 1.442695, %v824_v8 }
 0x25f   : > { %863 = vperm.xlu1 %1668, %v2029_v49   ;;  %v907_v49 = vld [vmem:[#allocation4 + $0x10] sm:$0xff] }
 0x263   : > { %873 = vperm.xlu1 %1668, %v2045_v58   ;;  %v910_v58 = vld [vmem:[#allocation4 + $0x28] sm:$0xff] }
 0x267   : > { %878 = vperm.xlu1 %1668, %v2064_v3  }
 0x2bc   : > { %v849_v12 = vpop.permute.xlu1 %848 }
 0x2bd   : > { %v882_v14 = vsub.f32 %v1946_v4, %v849_v12 }
 0x2be   : > { %v844_v16 = vpop.permute.xlu0 %843 }
 0x2bf   : > { %v891_v18 = vmul.f32 1.442695, %v882_v14  ;;  %v881_v19 = vsub.f32 %v1950_v7, %v844_v16 }
 0x2c1   : > { %1669 = vpow2.f32 %v891_v18  ;;  %v889_v20 = vmul.f32 1.442695, %v881_v19 }
 0x2c3   : > { %1671 = vpow2.f32 %v889_v20 }
 0x2ce   : > { %v1670_v21 = vpop.eup %1669  ;;  %v859_v24 = vpop.permute.xlu1 %858 }
 0x2cf   : > { %v884_v26 = vsub.f32 %v1954_v9, %v859_v24  ;;  %v924_v31 = vsel %vm784_vm1, %v1670_v21, 0.0  ;;  %v825_v24 = vmul.f32 1.442695, %v817_v35 }
 0x2d0   : > { %v1672_v34 = vpop.eup %1671  ;;  %925 = vadd.xlane.f32.xlu0 %v924_v31  ;;  %v827_v31 = vmul.f32 1.442695, %v818_v32 }
 0x2d1   : > { %v895_v36 = vmul.f32 1.442695, %v884_v26  ;;  %1612 = vmatprep.mubr.msk.f32.mxu0 %vm784_vm1, %v1672_v34  ;;  %v921_v4 = vsel %vm784_vm1, %v1672_v34, 0.0 }
 0x2d2   : > { %922 = vadd.xlane.f32.xlu1 %v921_v4  ;;  %1613 = vmatmul.mubr.msk.f32.vlgmr.msra.gmra.mxu0 %vm784_vm1, %v1670_v21  ;;  %v854_v7 = vpop.permute.xlu1 %853  ;;  %v906_v4 = vld [vmem:[#allocation4 + $0x8] sm:$0xff] }
 0x2d3   : > { %1673 = vpow2.f32 %v895_v36  ;;  %v883_v39 = vsub.f32 %v1956_v10, %v854_v7 }
 0x2d5   : > { %v893_v41 = vmul.f32 1.442695, %v883_v39 }
 0x2d6   : > { %v869_v42 = vpop.permute.xlu1 %868 }
 0x2d7   : > { %1675 = vpow2.f32 %v893_v41  ;;  %v886_v9 = vsub.f32 %v1958_v11, %v869_v42  ;;  %v835_v42 = vmul.f32 1.442695, %v822_v48 }
 0x2d9   : > { %v899_v46 = vmul.f32 1.442695, %v886_v9 }
 0x2da   : > { %v864_v47 = vpop.permute.xlu1 %863 }
 0x2db   : > { %1677 = vpow2.f32 %v899_v46  ;;  %v885_v50 = vsub.f32 %v1962_v13, %v864_v47 }
 0x2dd   : > { %v897_v54 = vmul.f32 1.442695, %v885_v50 }
 0x2de   : > { %v874_v55 = vpop.permute.xlu1 %873 }
 0x2df   : > { %1679 = vpow2.f32 %v897_v54  ;;  %v887_v56 = vsub.f32 %v1968_v17, %v874_v55 }
 0x2e0   : > { %v1674_v63 = vpop.eup %1673 }
 0x2e1   : > { %v901_v0 = vmul.f32 1.442695, %v887_v56  ;;  %v930_v1 = vsel %vm784_vm1, %v1674_v63, 0.0 }
 0x2e2   : > { %931 = vadd.xlane.f32.xlu1 %v930_v1  ;;  %v879_v10 = vpop.permute.xlu1 %878 }
 0x2e3   : > { %1681 = vpow2.f32 %v901_v0  ;;  %v888_v12 = vsub.f32 %v1966_v15, %v879_v10  ;;  %v911_v0 = vld [vmem:[#allocation4 + $0x30] sm:$0xff] }
 0x2e4   : > { %v1676_v11 = vpop.eup %1675 }
 0x2e5   : > { %v903_v14 = vmul.f32 1.442695, %v888_v12  ;;  %1615 = vmatprep.mubr.msk.f32.mxu0 %vm784_vm1, %v1676_v11  ;;  %v927_v13 = vsel %vm784_vm1, %v1676_v11, 0.0 }
 0x2e6   : > { %1616 = vmatmul.mubr.msk.f32.gmra.mxu0 %vm784_vm1, %v1674_v63  ;;  %928 = vadd.xlane.f32.xlu0 %v927_v13  ;;  %v912_v13 = vld [vmem:[#allocation4 + $0x38] sm:$0xff] }
 0x2e7   : > { %1683 = vpow2.f32 %v903_v14 }
 0x2e8   : > { %v1678_v17 = vpop.eup %1677  ;;  %1685 = vpow2.f32 %v825_v24 }
 0x2e9   : > { %v936_v16 = vsel %vm784_vm1, %v1678_v17, 0.0  ;;  %1687 = vpow2.f32 %v827_v31 }
 0x2ea   : > { %937 = vadd.xlane.f32.xlu1 %v936_v16  ;;  %1689 = vpow2.f32 %v831_v27 }
 0x2eb   : > { %1691 = vpow2.f32 %v829_v25 }
 0x2ec   : > { %v1680_v18 = vpop.eup %1679  ;;  %1693 = vpow2.f32 %v835_v42 }
 0x2ed   : > { %1618 = vmatprep.mubr.msk.f32.mxu1 %vm784_vm1, %v1680_v18  ;;  %v933_v19 = vsel %vm784_vm1, %v1680_v18, 0.0  ;;  %1695 = vpow2.f32 %v833_v51 }
 0x2ee   : > { %1619 = vmatmul.mubr.msk.f32.vlgmr.msra.gmra.mxu1 %vm784_vm1, %v1678_v17  ;;  %934 = vadd.xlane.f32.xlu0 %v933_v19  ;;  %1697 = vpow2.f32 %v837_v61 }
 0x2ef   : > { %1699 = vpow2.f32 %v839_v45 }
 0x2f0   : > { %v1682_v15 = vpop.eup %1681 }
 0x2f1   : > { %1621 = vmatprep.mubr.msk.f32.mxu1 %vm784_vm1, %v1682_v15  ;;  %v939_v20 = vsel %vm784_vm1, %v1682_v15, 0.0 }
 0x2f2   : > { %940 = vadd.xlane.f32.xlu0 %v939_v20 }
 0x2f4   : > { %v1684_v21 = vpop.eup %1683 }
 0x2f5   : > { %1622 = vmatmul.mubr.msk.f32.gmra.mxu1 %vm784_vm1, %v1684_v21  ;;  %v942_v26 = vsel %vm784_vm1, %v1684_v21, 0.0  ;;  %v1686_v34 = vpop.eup %1685 }
 0x2f6   : > { %943 = vadd.xlane.f32.xlu1 %v942_v26  ;;  %v1688_v36 = vpop.eup %1687  ;;  %v913_v32 = vmul.f32 %v1686_v34, %v905_v33 }
 0x2f7   : > { %v914_v35 = vmul.f32 %v1688_v36, %v906_v4  ;;  %v1690_v2 = vpop.eup %1689 }
 0x2f8   : > { %v916_v48 = vmul.f32 %v1690_v2, %v908_v40  ;;  %v1692_v5 = vpop.eup %1691 }
 0x2f9   : > { %v915_v9 = vmul.f32 %v1692_v5, %v907_v49  ;;  %v1694_v46 = vpop.eup %1693 }
 0x2fa   : > { %v918_v47 = vmul.f32 %v1694_v46, %v910_v58  ;;  %v1696_v50 = vpop.eup %1695 }
 0x2fb   : > { %v917_v55 = vmul.f32 %v1696_v50, %v909_v60  ;;  %v1698_v56 = vpop.eup %1697 }
 0x2fc   : > { %v919_v12 = vmul.f32 %v1698_v56, %v911_v0  ;;  %v1700_v11 = vpop.eup %1699 }
 0x2fd   : > { %v920_v18 = vmul.f32 %v1700_v11, %v912_v13 }
 0x307   : > { %972 = vperm.xlu1 %1668, %v1686_v34  }
 0x308   : > { %977 = vperm.xlu0 %1667, %v1688_v36  }
 0x359   : > { %v926_v7 = vpop.xlane.xlu0 %925 }
 0x35a   : > { %v946_v28 = vadd.f32 %v926_v7, %v914_v35 }
 0x35b   : > { %v923_v39 = vpop.xlane.xlu1 %922 }
 0x35c   : > { %955 = vst.msk [vmem:[#allocation4 + $0x8] sm:$0xff] %vm630_vm0, %v946_v28  ;;  %v945_v41 = vadd.f32 %v923_v39, %v913_v32  ;;  %v2139_v28 = vld [vmem:[%s2185_s5] ss:$0 sm:$0xff] }
 0x35e   : > { %954 = vst.msk [vmem:[#allocation4] sm:$0xff] %vm630_vm0, %v945_v41 }
 0x363   : > { %v1191_v57 = vld [vmem:[#allocation4 + $0x8] sm:$0xff] }
 0x364   : > { %1205 = vperm.xlu1 %1668, %v1191_v57  }
 0x365   : > { %v1190_v59 = vld [vmem:[#allocation4] sm:$0xff] }
 0x366   : > { %1200 = vperm.xlu0 %1667, %v1190_v59  }
 0x36b   : > { %v932_v43 = vpop.xlane.xlu1 %931 }
 0x36c   : > { %v948_v53 = vadd.f32 %v932_v43, %v916_v48 }
 0x36e   : > { %957 = vst.msk [vmem:[#allocation4 + $0x18] sm:$0xff] %vm630_vm0, %v948_v53 }
 0x36f   : > { %v929_v52 = vpop.xlane.xlu0 %928 }
 0x370   : > { %v947_v62 = vadd.f32 %v929_v52, %v915_v9 }
 0x372   : > { %956 = vst.msk [vmem:[#allocation4 + $0x10] sm:$0xff] %vm630_vm0, %v947_v62 }
 0x373   : > { %v938_v54 = vpop.xlane.xlu1 %937 }
 0x374   : > { %v950_v3 = vadd.f32 %v938_v54, %v918_v47 }
 0x375   : > { %v1193_v8 = vld [vmem:[#allocation4 + $0x18] sm:$0xff] }
 0x376   : > { %959 = vst.msk [vmem:[#allocation4 + $0x28] sm:$0xff] %vm630_vm0, %v950_v3  ;;  %1215 = vperm.xlu0 %1667, %v1193_v8  }
 0x377   : > { %v935_v63 = vpop.xlane.xlu0 %934 }
 0x378   : > { %v949_v1 = vadd.f32 %v935_v63, %v917_v55 }
 0x379   : > { %v1192_v10 = vld [vmem:[#allocation4 + $0x10] sm:$0xff] }
 0x37a   : > { %958 = vst.msk [vmem:[#allocation4 + $0x20] sm:$0xff] %vm630_vm0, %v949_v1  ;;  %1210 = vperm.xlu1 %1668, %v1192_v10  }
 0x37b   : > { %v941_v14 = vpop.xlane.xlu0 %940 }
 0x37c   : > { %v951_v17 = vadd.f32 %v941_v14, %v919_v12 }
 0x37d   : > { %v1195_v16 = vld [vmem:[#allocation4 + $0x28] sm:$0xff] }
 0x37e   : > { %960 = vst.msk [vmem:[#allocation4 + $0x30] sm:$0xff] %vm630_vm0, %v951_v17  ;;  %1225 = vperm.xlu0 %1667, %v1195_v16  }
 0x37f   : > { %v944_v19 = vpop.xlane.xlu1 %943 }
 0x380   : > { %v952_v15 = vadd.f32 %v944_v19, %v920_v18 }
 0x381   : > { %v1194_v20 = vld [vmem:[#allocation4 + $0x20] sm:$0xff] }
 0x382   : > { %961 = vst.msk [vmem:[#allocation4 + $0x38] sm:$0xff] %vm630_vm0, %v952_v15  ;;  %1220 = vperm.xlu1 %1668, %v1194_v20  }
 0x383   : > { %v973_v26 = vpop.permute.xlu1 %972  ;;  %v978_v31 = vpop.permute.xlu0 %977 }
 0x384   : > { %v1011_v27 = vmul.f32 0.0, %v978_v31  ;;  %v1010_v35 = vmul.f32 0.0, %v973_v26 }
 0x385   : > { %v1196_v21 = vld [vmem:[#allocation4 + $0x30] sm:$0xff] }
 0x386   : > { %1230 = vperm.xlu1 %1668, %v1196_v21  }
 0x389   : > { %v1197_v24 = vld [vmem:[#allocation4 + $0x38] sm:$0xff] }
 0x38a   : > { %982 = vperm.xlu1 %1668, %v1692_v5   ;;  %1235 = vperm.xlu0 %1667, %v1197_v24  }
 0x38e   : > { %992 = vperm.xlu1 %1668, %v1696_v50   ;;  %987 = vperm.xlu0 %1667, %v1690_v2  }
 0x392   : > { %1002 = vperm.xlu1 %1668, %v1698_v56   ;;  %997 = vperm.xlu0 %1667, %v1694_v46   ;;  %v1614_v4 = vpop.f32.mrf.mxu0 }
 0x393   : > { %v1156_v7 = vadd.f32 %v1614_v4, %v1011_v27 }
 0x394   : > { %v1116_v33 = vpop.f32.mrf.mxu0 }
 0x395   : > { %v1155_v32 = vadd.f32 %v1116_v33, %v1010_v35 }
 0x396   : > { %1007 = vperm.xlu0 %1667, %v1700_v11  }
 0x3a6   : > { %v1617_v43 = vpop.f32.mrf.mxu0 }
 0x3a8   : > { %v1126_v46 = vpop.f32.mrf.mxu0 }
 0x3df   : > { %v1206_v34 = vpop.permute.xlu1 %1205 }
 0x3e0   : > { %1701 = vrcp.f32 %v1206_v34 }
 0x3e1   : > { %v1201_v36 = vpop.permute.xlu0 %1200 }
 0x3e2   : > { %1703 = vrcp.f32 %v1201_v36 }
 0x3ed   : > { %v1702_v25 = vpop.eup %1701 }
 0x3ee   : > { %v1241_v39 = vmul.f32 %v1702_v25, %v1156_v7 }
 0x3ef   : > { %v1704_v41 = vpop.eup %1703 }
 0x3f0   : > { %v1262_v42 = vadd.f32 %v2139_v28, %v1241_v39  ;;  %v1239_v51 = vmul.f32 %v1704_v41, %v1155_v32 }
 0x3f1   : > { %v1216_v40 = vpop.permute.xlu0 %1215 }
 0x3f2   : > { %v1278_v57 = vadd.f32 %v1262_v42, %v1881_v22  ;;  %v1261_v59 = vadd.f32 %v2139_v28, %v1239_v51  ;;  %v1620_v22 = vpop.f32.mrf.mxu1 }
 0x3f4   : > { %1286 = vst [vmem:[%s2146_s10 + $0x8] sm:$0xff] %v1278_v57  ;;  %v1277_v61 = vadd.f32 %v1261_v59, %v1839_v6  ;;  %v1136_v47 = vpop.f32.mrf.mxu1 }
 0x3f5   : > { %v1211_v2 = vpop.permute.xlu1 %1210 }
 0x3f6   : > { %1285 = vst [vmem:[%s2146_s10] sm:$0xff] %v1277_v61  ;;  %1705 = vrcp.f32 %v1211_v2  ;;  %v1623_v8 = vpop.f32.mrf.mxu1 }
 0x3f7   : > { %1707 = vrcp.f32 %v1216_v40 }
 0x3f8   : > { %v1146_v16 = vpop.f32.mrf.mxu1 }
 0x3f9   : > { %v1226_v48 = vpop.permute.xlu0 %1225 }
 0x3fd   : > { %v1221_v45 = vpop.permute.xlu1 %1220 }
 0x3fe   : > { %1709 = vrcp.f32 %v1221_v45 }
 0x3ff   : > { %1711 = vrcp.f32 %v1226_v48 }
 0x401   : > { %v1231_v5 = vpop.permute.xlu1 %1230 }
 0x402   : > { %1713 = vrcp.f32 %v1231_v5 }
 0x403   : > { %v1706_v6 = vpop.eup %1705 }
 0x404   : > { %v1708_v3 = vpop.eup %1707 }
 0x405   : > { %v1236_v49 = vpop.permute.xlu0 %1235  ;;  %v983_v53 = vpop.permute.xlu1 %982 }
 0x406   : > { %v1012_v9 = vmul.f32 0.0, %v983_v53  ;;  %1715 = vrcp.f32 %v1236_v49 }
 0x408   : > { %v1157_v52 = vadd.f32 %v1126_v46, %v1012_v9 }
 0x409   : > { %v988_v58 = vpop.permute.xlu0 %987  ;;  %v993_v62 = vpop.permute.xlu1 %992 }
 0x40a   : > { %v1243_v50 = vmul.f32 %v1706_v6, %v1157_v52  ;;  %v1013_v54 = vmul.f32 0.0, %v988_v58  ;;  %v1014_v60 = vmul.f32 0.0, %v993_v62 }
 0x40b   : > { %v1710_v0 = vpop.eup %1709 }
 0x40c   : > { %v1263_v55 = vadd.f32 %v2139_v28, %v1243_v50  ;;  %v1158_v56 = vadd.f32 %v1617_v43, %v1013_v54  ;;  %v1159_v63 = vadd.f32 %v1136_v47, %v1014_v60  ;;  %v1712_v20 = vpop.eup %1711 }
 0x40d   : > { %v998_v1 = vpop.permute.xlu0 %997  ;;  %v1003_v10 = vpop.permute.xlu1 %1002 }
 0x40e   : > { %v1279_v12 = vadd.f32 %v1263_v55, %v1884_v23  ;;  %v1245_v11 = vmul.f32 %v1708_v3, %v1158_v56  ;;  %v1247_v14 = vmul.f32 %v1710_v0, %v1159_v63  ;;  %v1015_v13 = vmul.f32 0.0, %v998_v1 }
 0x40f   : > { %v1016_v17 = vmul.f32 0.0, %v1003_v10  ;;  %v1714_v26 = vpop.eup %1713 }
 0x410   : > { %1287 = vst [vmem:[%s2146_s10 + $0x10] sm:$0xff] %v1279_v12  ;;  %v1264_v18 = vadd.f32 %v2139_v28, %v1245_v11  ;;  %v1265_v19 = vadd.f32 %v2139_v28, %v1247_v14  ;;  %v1160_v15 = vadd.f32 %v1620_v22, %v1015_v13 }
 0x411   : > { %v1161_v21 = vadd.f32 %v1146_v16, %v1016_v17  ;;  %v1008_v24 = vpop.permute.xlu0 %1007 }
 0x412   : > { %v1280_v23 = vadd.f32 %v1264_v18, %v1898_v29  ;;  %v1281_v31 = vadd.f32 %v1265_v19, %v1901_v30  ;;  %v1249_v34 = vmul.f32 %v1712_v20, %v1160_v15  ;;  %v1017_v36 = vmul.f32 0.0, %v1008_v24 }
 0x413   : > { %v1251_v4 = vmul.f32 %v1714_v26, %v1161_v21  ;;  %v1716_v35 = vpop.eup %1715 }
 0x414   : > { %1288 = vst [vmem:[%s2146_s10 + $0x18] sm:$0xff] %v1280_v23  ;;  %1289 = vst [vmem:[%s2146_s10 + $0x20] sm:$0xff] %v1281_v31  ;;  %v1266_v27 = vadd.f32 %v2139_v28, %v1249_v34  ;;  %v1162_v33 = vadd.f32 %v1623_v8, %v1017_v36 }
 0x415   : > { %v1267_v7 = vadd.f32 %v2139_v28, %v1251_v4 }
 0x416   : > { %v1282_v25 = vadd.f32 %v1266_v27, %v1914_v37  ;;  %v1253_v32 = vmul.f32 %v1716_v35, %v1162_v33 }
 0x417   : > { %v1283_v29 = vadd.f32 %v1267_v7, %v1917_v38 }
 0x418   : > { %1290 = vst [vmem:[%s2146_s10 + $0x28] sm:$0xff] %v1282_v25  ;;  %v1268_v30 = vadd.f32 %v2139_v28, %v1253_v32 }
 0x419   : > { %1291 = vst [vmem:[%s2146_s10 + $0x30] sm:$0xff] %v1283_v29 }
 0x41a   : > { %v1284_v39 = vadd.f32 %v1268_v30, %v1927_v44 }
 0x41c   : > { %1292 = vst [vmem:[%s2146_s10 + $0x38] sm:$0xff] %v1284_v39 }
 0x41d PF: > { %s18_s29 = sadd.s32 1, %s1739_s29   ;;  %s2189_s27 = smov %s1735_s28 }
 0x41e   : > { %p15_p5 = scmp.ge.s32.totalorder %s18_s29, 4   ;;  %s2190_s28 = smov %s2192_s30 }
 0x420   :  { %17 = sbr.rel (!%p15_p5) target bundleno = 2 (0x2), region = 102 }

</bundles_post_ra>
